<compile_context>
chip_gen: v5e
topology: v5e:2x2
jax: 0.10.0
libtpu: 0.0.40
codegen_flags: <defaults>
</compile_context>

<pallas_src>
import functools

import jax
import jax.numpy as jnp
from jax.experimental import pallas as pl
from jax.experimental.pallas import tpu as pltpu

LN_EPS = 1e-5
NEG_BIG = -1e30   # large finite negative instead of -inf (NaN-safe masking)


# ----------------------------------------------------------------------------- helpers
def _masked_softmax(s, mask2d, row_zero):
    """AttentionBlock._mask_by_1dmask + softmax on an (L, L) tile.

    mask2d:   (L, L) float 0/1  -> positions where both query & key are valid
    row_zero: (L, 1) float 0/1  -> rows that would be all -inf (set to 0 -> uniform softmax)
    """
    s = jnp.where(mask2d > 0.5, s, NEG_BIG)
    s = jnp.where(row_zero > 0.5, 0.0, s)
    m = jnp.max(s, axis=-1, keepdims=True)
    e = jnp.exp(s - m)
    return e / jnp.sum(e, axis=-1, keepdims=True)


def _layernorm(y):
    mu = jnp.mean(y, axis=-1, keepdims=True)
    var = jnp.mean((y - mu) ** 2, axis=-1, keepdims=True)
    return (y - mu) * jax.lax.rsqrt(var + LN_EPS)


# ----------------------------------------------------------------------------- kernels
def attn_stack_kernel(x_ref, m2d_ref, rz_ref, rc_ref,
                      wq_ref, bq_ref, wk_ref, bk_ref, wv_ref, bv_ref,
                      wo_ref, bo_ref, g_ref, bt_ref, fg_ref, fb_ref,
                      o_ref, x_sc, refw_sc, *, num_heads):
    """Full StackedAttention forward. grid = (batch, layer); layer axis carries x in VMEM."""
    lidx = pl.program_id(1)
    num_layers = pl.num_programs(1)
    _, L, H = x_ref.shape
    dk = H // num_heads
    scale = 1.0 / (dk ** 0.5)

    m2d = m2d_ref[0]            # (L, L)
    rz = rz_ref[0]              # (L, 1)

    @pl.when(lidx == 0)
    def _():
        # load input activations + compute refCov softmax once per batch element
        x_sc[...] = x_ref[0]
        refw_sc[...] = _masked_softmax(jnp.abs(rc_ref[0]), m2d, rz)

    x = x_sc[...]                                   # (L, H) f32
    x16 = x.astype(jnp.bfloat16)

    # fused QKV projections (bf16 MXU, f32 accumulation); 1/sqrt(dk) folded into q
    q = (jnp.dot(x16, wq_ref[0], preferred_element_type=jnp.float32) + bq_ref[0]) * scale
    k = jnp.dot(x16, wk_ref[0], preferred_element_type=jnp.float32) + bk_ref[0]
    v = jnp.dot(x16, wv_ref[0], preferred_element_type=jnp.float32) + bv_ref[0]
    v16 = v.astype(jnp.bfloat16)

    # refCov context: one (L,L)x(L,H) matmul shared by all heads
    ref_ctx = jnp.dot(refw_sc[...].astype(jnp.bfloat16), v16,
                      preferred_element_type=jnp.float32)            # (L, H)

    # per-head attention -> concatenate into a full (L, H) tile
    head_ctx = []
    for h in range(num_heads):                      # static, small head count
        sl = slice(h * dk, (h + 1) * dk)
        qh = q[:, sl].astype(jnp.bfloat16)
        kh = k[:, sl].astype(jnp.bfloat16)
        s = jax.lax.dot_general(qh, kh, (((1,), (1,)), ((), ())),
                                preferred_element_type=jnp.float32)  # (L, L)
        aw = _masked_softmax(s, m2d, rz)
        head_ctx.append(jnp.dot(aw.astype(jnp.bfloat16), v16[:, sl],
                                preferred_element_type=jnp.float32))
    attn_ctx = jnp.concatenate(head_ctx, axis=-1)                    # (L, H)

    # combined = (attn_softmax + ref_softmax) / rowsum == 0.5 * (attn + ref)
    ctx = 0.5 * (attn_ctx + ref_ctx)

    # single output projection for all heads + residual + LayerNorm
    out = jnp.dot(ctx.astype(jnp.bfloat16), wo_ref[0],
                  preferred_element_type=jnp.float32) + bo_ref[0]
    y = x + out
    yn = _layernorm(y) * g_ref[0] + bt_ref[0]
    x_sc[...] = yn

    @pl.when(lidx == num_layers - 1)
    def _():
        # final LayerNorm only on the row that is consumed (x[:, 0, :])
        row0 = yn[0:1, :]
        o_ref[0] = _layernorm(row0) * fg_ref[0] + fb_ref[0]


def mlp_kernel(x_ref, w1_ref, b1_ref, w2_ref, b2_ref, w3_ref, b3_ref,
               w4_ref, b4_ref, o_ref):
    h = x_ref[...]
    for w_ref, b_ref in ((w1_ref, b1_ref), (w2_ref, b2_ref), (w3_ref, b3_ref)):
        h = jnp.maximum(
            jnp.dot(h.astype(jnp.bfloat16), w_ref[...],
                    preferred_element_type=jnp.float32) + b_ref[...], 0.0)
    o_ref[...] = jnp.dot(h.astype(jnp.bfloat16), w4_ref[...],
                         preferred_element_type=jnp.float32) + b4_ref[...]


# ----------------------------------------------------------------------------- wrappers
def attention_stack(x, mask2d, row_zero, refcov, attn_params, num_heads):
    """x: (B2, L, H) f32 -> (B2, H) f32 (final-norm'd row 0 per batch element)."""
    B2, L, H = x.shape
    (WQ, BQ, WK, BK, WV, BV, WO, BO, G, Bt, FG, FB) = attn_params
    num_layers = WQ.shape[0]

    const3 = lambda b, l: (b, 0, 0)                        # batch-resident tiles
    wspec = pl.BlockSpec((1, H, H), lambda b, l: (l, 0, 0))  # per-layer weights
    bspec = pl.BlockSpec((1, 1, H), lambda b, l: (l, 0, 0))  # per-layer vectors
    fspec = pl.BlockSpec((1, 1, H), lambda b, l: (0, 0, 0))  # final-norm params

    out = pl.pallas_call(
        functools.partial(attn_stack_kernel, num_heads=num_heads),
        out_shape=jax.ShapeDtypeStruct((B2, 1, H), jnp.float32),
        grid_spec=pltpu.PrefetchScalarGridSpec(
            num_scalar_prefetch=0,
            grid=(B2, num_layers),
            in_specs=[
                pl.BlockSpec((1, L, H), const3),    # x
                pl.BlockSpec((1, L, L), const3),    # mask2d
                pl.BlockSpec((1, L, 1), const3),    # row_zero
                pl.BlockSpec((1, L, L), const3),    # refCov
                wspec, bspec,                       # Wq, bq
                wspec, bspec,                       # Wk, bk
                wspec, bspec,                       # Wv, bv
                wspec, bspec,                       # Wo, bo
                bspec, bspec,                       # gamma, beta
                fspec, fspec,                       # final gamma, beta
            ],
            out_specs=pl.BlockSpec((1, 1, H), const3),
            scratch_shapes=[pltpu.VMEM((L, H), jnp.float32),   # carried activations
                            pltpu.VMEM((L, L), jnp.float32)],  # cached ref softmax
        ),
        compiler_params=pltpu.CompilerParams(
            dimension_semantics=("parallel", "arbitrary"),
            vmem_limit_bytes=64 * 1024 * 1024),
    )(x, mask2d, row_zero, refcov, WQ, BQ, WK, BK, WV, BV, WO, BO, G, Bt, FG, FB)
    return out[:, 0, :]


def predicter(x, mlp_p):
    rows = x.shape[0]
    return pl.pallas_call(
        mlp_kernel,
        out_shape=jax.ShapeDtypeStruct((rows, 1), jnp.float32),
    )(x, *mlp_p)


def process_node_feature(ts, mask):
    """StackedAttention.process_node_feature: pack flat node features into (B, L, H)."""
    B, L = mask.shape
    lens = mask.astype(jnp.int32).sum(axis=1)                # (B,)
    starts = jnp.cumsum(lens) - lens                         # (B,)
    pos = jnp.arange(L, dtype=jnp.int32)[None, :]            # (1, L)
    valid = pos < lens[:, None]
    idx = jnp.where(valid, starts[:, None] + pos, 0)
    gathered = ts[idx]                                       # (B, L, H)
    return jnp.where(valid[..., None], gathered, 0.0).astype(jnp.float32)


def model_forward(dual, node_wt, node_mut, mask, cov_wt, cov_mut, params):
    B, L = mask.shape
    # wt and mut paths fused along batch (weights streamed once for both paths)
    x_wt = process_node_feature(node_wt, mask)
    x_mut = process_node_feature(node_mut, mask)
    x2 = jnp.concatenate([x_wt, x_mut], axis=0)                        # (2B, L, H)
    cov2 = jnp.concatenate([cov_wt, cov_mut], axis=0).astype(jnp.float32)

    mask_f = mask.astype(jnp.float32)
    mask2 = jnp.concatenate([mask_f, mask_f], axis=0)                  # (2B, L)
    mask2d = mask2[:, :, None] * mask2[:, None, :]                     # (2B, L, L)
    any_valid = (jnp.sum(mask2, axis=1, keepdims=True) > 0).astype(jnp.float32)
    row_zero = jnp.maximum(1.0 - mask2, 1.0 - any_valid)[:, :, None]   # (2B, L, 1)

    emb = attention_stack(x2, mask2d, row_zero, cov2,
                          params["attn"], params["num_heads"])          # (2B, H)
    wt_emb, mt_emb = emb[:B], emb[B:]

    if dual:
        mlp_in = jnp.concatenate(
            [jnp.concatenate([wt_emb, mt_emb], axis=1),
             jnp.concatenate([mt_emb, wt_emb], axis=1)], axis=0)        # (2B, 2H)
        res = predicter(mlp_in, params["mlp"])
        return res[:B], res[B:]
    return predicter(jnp.concatenate([wt_emb, mt_emb], axis=1), params["mlp"])


# ----------------------------------------------------------------------------- params
def _init_linear(key, din, dout):
    k1, k2 = jax.random.split(key)
    w = (jax.random.normal(k1, (din, dout), jnp.float32) / (din ** 0.5)).astype(jnp.bfloat16)
    b = jax.random.normal(k2, (1, dout), jnp.float32) * 0.01
    return w, b


def init_params(key, hidden, num_heads, num_layers, mlp_dims):
    WQ, BQ, WK, BK, WV, BV, WO, BO, G, Bt = ([] for _ in range(10))
    for _ in range(num_layers):
        key, kq, kk, kv, ko = jax.random.split(key, 5)
        wq, bq = _init_linear(kq, hidden, hidden); WQ.append(wq); BQ.append(bq)
        wk, bk = _init_linear(kk, hidden, hidden); WK.append(wk); BK.append(bk)
        wv, bv = _init_linear(kv, hidden, hidden); WV.append(wv); BV.append(bv)
        wo, bo = _init_linear(ko, hidden, hidden); WO.append(wo); BO.append(bo)
        G.append(jnp.ones((1, hidden), jnp.float32))
        Bt.append(jnp.zeros((1, hidden), jnp.float32))
    stack = lambda xs: jnp.stack(xs, axis=0)
    attn = (stack(WQ), stack(BQ), stack(WK), stack(BK), stack(WV), stack(BV),
            stack(WO), stack(BO), stack(G), stack(Bt),
            jnp.ones((1, 1, hidden), jnp.float32),
            jnp.zeros((1, 1, hidden), jnp.float32))

    mlp = []
    for din, dout in zip(mlp_dims[:-1], mlp_dims[1:]):
        key, kl = jax.random.split(key)
        w, b = _init_linear(kl, din, dout)
        mlp.extend([w, b])
    return {"attn": attn, "mlp": tuple(mlp), "num_heads": num_heads}


# ----------------------------------------------------------------------------- main
if __name__ == "__main__":
    B, L, H = 2, 8, 32           # small stand-ins for (B, L, 1536) in the original
    NUM_HEADS = 4                # original: 8
    NUM_LAYERS = 4               # StackedAttention(4, ...)
    MLP_DIMS = (2 * H, 32, 16, 8, 1)   # original: 3072 -> 2048 -> 512 -> 64 -> 1

    key = jax.random.PRNGKey(0)
    params = init_params(key, H, NUM_HEADS, NUM_LAYERS, MLP_DIMS)

    # mask with per-sample lengths [8, 5] -> 13 total nodes (ragged, like graph batching)
    mask = jnp.array([[1, 1, 1, 1, 1, 1, 1, 1],
                      [1, 1, 1, 1, 1, 0, 0, 0]], dtype=jnp.int32)
    n_nodes = int(mask.sum())

    k1, k2, k3, k4 = jax.random.split(jax.random.PRNGKey(0), 4)
    node_wt = jax.random.normal(k1, (n_nodes, H), jnp.float32)
    node_mut = jax.random.normal(k2, (n_nodes, H), jnp.float32)
    cov_wt = jax.random.normal(k3, (B, L, L), jnp.float32)
    cov_mut = jax.random.normal(k4, (B, L, L), jnp.float32)

    res1, res2 = model_forward(True, node_wt, node_mut, mask, cov_wt, cov_mut, params)
    jax.block_until_ready((res1, res2))
    assert res1.shape == (B, 1) and res2.shape == (B, 1)
    print("KERNEL_OK")
</pallas_src>

<mosaic_0001>
module attributes {stable_mosaic.version = 11 : i64} {
  func.func @attn_stack_kernel(%arg0: i32, %arg1: i32, %arg2: memref<1x8x32xf32, #tpu.memory_space<vmem>>, %arg3: memref<1x8x8xf32, #tpu.memory_space<vmem>>, %arg4: memref<1x8x1xf32, #tpu.memory_space<vmem>>, %arg5: memref<1x8x8xf32, #tpu.memory_space<vmem>>, %arg6: memref<1x32x32xbf16, #tpu.memory_space<vmem>>, %arg7: memref<1x1x32xf32, #tpu.memory_space<vmem>>, %arg8: memref<1x32x32xbf16, #tpu.memory_space<vmem>>, %arg9: memref<1x1x32xf32, #tpu.memory_space<vmem>>, %arg10: memref<1x32x32xbf16, #tpu.memory_space<vmem>>, %arg11: memref<1x1x32xf32, #tpu.memory_space<vmem>>, %arg12: memref<1x32x32xbf16, #tpu.memory_space<vmem>>, %arg13: memref<1x1x32xf32, #tpu.memory_space<vmem>>, %arg14: memref<1x1x32xf32, #tpu.memory_space<vmem>>, %arg15: memref<1x1x32xf32, #tpu.memory_space<vmem>>, %arg16: memref<1x1x32xf32, #tpu.memory_space<vmem>>, %arg17: memref<1x1x32xf32, #tpu.memory_space<vmem>>, %arg18: memref<1x1x32xf32, #tpu.memory_space<vmem>>, %arg19: memref<8x32xf32, #tpu.memory_space<vmem>>, %arg20: memref<8x8xf32, #tpu.memory_space<vmem>>) attributes {dimension_semantics = [#tpu.dimension_semantics<parallel>, #tpu.dimension_semantics<arbitrary>], iteration_bounds = array<i64: 4, 4>, scalar_prefetch = 0 : i64, scratch_operands = 2 : i64, tpu.core_type = #tpu.core_type<tc>, window_params = [{transform_indices = @transform_0, window_bounds = array<i64: 1, 8, 32>}, {transform_indices = @transform_1, window_bounds = array<i64: 1, 8, 8>}, {transform_indices = @transform_2, window_bounds = array<i64: 1, 8, 1>}, {transform_indices = @transform_3, window_bounds = array<i64: 1, 8, 8>}, {transform_indices = @transform_4, window_bounds = array<i64: 1, 32, 32>}, {transform_indices = @transform_5, window_bounds = array<i64: 1, 1, 32>}, {transform_indices = @transform_6, window_bounds = array<i64: 1, 32, 32>}, {transform_indices = @transform_7, window_bounds = array<i64: 1, 1, 32>}, {transform_indices = @transform_8, window_bounds = array<i64: 1, 32, 32>}, {transform_indices = @transform_9, window_bounds = array<i64: 1, 1, 32>}, {transform_indices = @transform_10, window_bounds = array<i64: 1, 32, 32>}, {transform_indices = @transform_11, window_bounds = array<i64: 1, 1, 32>}, {transform_indices = @transform_12, window_bounds = array<i64: 1, 1, 32>}, {transform_indices = @transform_13, window_bounds = array<i64: 1, 1, 32>}, {pipeline_mode = #tpu.pipeline_mode<synchronous>, transform_indices = @transform_14, window_bounds = array<i64: 1, 1, 32>}, {pipeline_mode = #tpu.pipeline_mode<synchronous>, transform_indices = @transform_15, window_bounds = array<i64: 1, 1, 32>}, {transform_indices = @transform_16, window_bounds = array<i64: 1, 1, 32>}]} {
    %c0 = arith.constant 0 : index
    %c0_0 = arith.constant 0 : index
    %c0_1 = arith.constant 0 : index
    %0 = vector.load %arg3[%c0, %c0_0, %c0_1] : memref<1x8x8xf32, #tpu.memory_space<vmem>>, vector<1x8x8xf32>
    %1 = vector.shape_cast %0 : vector<1x8x8xf32> to vector<8x8xf32>
    %c0_2 = arith.constant 0 : index
    %c0_3 = arith.constant 0 : index
    %c0_4 = arith.constant 0 : index
    %2 = vector.load %arg4[%c0_2, %c0_3, %c0_4] : memref<1x8x1xf32, #tpu.memory_space<vmem>>, vector<1x8x1xf32>
    %3 = vector.shape_cast %2 : vector<1x8x1xf32> to vector<8x1xf32>
    %c0_i32 = arith.constant 0 : i32
    %4 = arith.cmpi eq, %arg1, %c0_i32 : i32
    %5 = arith.extui %4 : i1 to i32
    %c0_i32_5 = arith.constant 0 : i32
    %6 = arith.cmpi ne, %5, %c0_i32_5 : i32
    scf.if %6 {
      %c0_86 = arith.constant 0 : index
      %c0_87 = arith.constant 0 : index
      %c0_88 = arith.constant 0 : index
      %187 = vector.load %arg2[%c0_86, %c0_87, %c0_88] : memref<1x8x32xf32, #tpu.memory_space<vmem>>, vector<1x8x32xf32>
      %188 = vector.shape_cast %187 : vector<1x8x32xf32> to vector<8x32xf32>
      %c0_89 = arith.constant 0 : index
      %c0_90 = arith.constant 0 : index
      %189 = vector.load %arg19[%c0_89, %c0_90] : memref<8x32xf32, #tpu.memory_space<vmem>>, vector<8x32xf32>
      tpu.vector_store %arg19[%c0_89, %c0_90], %188 {strides = array<i32>} : memref<8x32xf32, #tpu.memory_space<vmem>>, vector<8x32xf32>,
      %c0_91 = arith.constant 0 : index
      %c0_92 = arith.constant 0 : index
      %c0_93 = arith.constant 0 : index
      %190 = vector.load %arg5[%c0_91, %c0_92, %c0_93] : memref<1x8x8xf32, #tpu.memory_space<vmem>>, vector<1x8x8xf32>
      %191 = vector.shape_cast %190 : vector<1x8x8xf32> to vector<8x8xf32>
      %192 = math.absf %191 : vector<8x8xf32>
      %cst_94 = arith.constant 5.000000e-01 : f32
      %193 = vector.broadcast %cst_94 : f32 to vector<8x8xf32>
      %194 = arith.cmpf ogt, %1, %193 : vector<8x8xf32>
      %cst_95 = arith.constant -1.000000e+30 : f32
      %195 = vector.broadcast %cst_95 : f32 to vector<8x8xf32>
      %196 = arith.select %194, %192, %195 : vector<8x8xi1>, vector<8x8xf32>
      %cst_96 = arith.constant 5.000000e-01 : f32
      %197 = vector.broadcast %cst_96 : f32 to vector<8x1xf32>
      %198 = arith.cmpf ogt, %3, %197 : vector<8x1xf32>
      %cst_97 = arith.constant 0.000000e+00 : f32
      %199 = vector.shape_cast %198 : vector<8x1xi1> to vector<8x1xi1>
      %200 = vector.broadcast %199 : vector<8x1xi1> to vector<8x8xi1>
      %201 = vector.broadcast %cst_97 : f32 to vector<8x8xf32>
      %202 = arith.select %200, %201, %196 : vector<8x8xi1>, vector<8x8xf32>
      %cst_98 = arith.constant dense<0xFF800000> : vector<8xf32>
      %203 = vector.multi_reduction <maximumf>, %202, %cst_98 [1] : vector<8x8xf32> to vector<8xf32>
      %204 = vector.shape_cast %203 : vector<8xf32> to vector<8x1xf32>
      %205 = vector.broadcast %204 : vector<8x1xf32> to vector<8x8xf32>
      %206 = arith.subf %202, %205 : vector<8x8xf32>
      %207 = math.exp %206 : vector<8x8xf32>
      %cst_99 = arith.constant dense<0.000000e+00> : vector<8xf32>
      %208 = vector.multi_reduction <add>, %207, %cst_99 [1] : vector<8x8xf32> to vector<8xf32>
      %209 = vector.shape_cast %208 : vector<8xf32> to vector<8x1xf32>
      %210 = vector.broadcast %209 : vector<8x1xf32> to vector<8x8xf32>
      %211 = arith.divf %207, %210 : vector<8x8xf32>
      %c0_100 = arith.constant 0 : index
      %c0_101 = arith.constant 0 : index
      %212 = vector.load %arg20[%c0_100, %c0_101] : memref<8x8xf32, #tpu.memory_space<vmem>>, vector<8x8xf32>
      tpu.vector_store %arg20[%c0_100, %c0_101], %211 {strides = array<i32>} : memref<8x8xf32, #tpu.memory_space<vmem>>, vector<8x8xf32>,
    } else {
    }
    %c0_6 = arith.constant 0 : index
    %c0_7 = arith.constant 0 : index
    %7 = vector.load %arg19[%c0_6, %c0_7] : memref<8x32xf32, #tpu.memory_space<vmem>>, vector<8x32xf32>
    %8 = arith.truncf %7 : vector<8x32xf32> to vector<8x32xbf16>
    %c0_8 = arith.constant 0 : index
    %c0_9 = arith.constant 0 : index
    %c0_10 = arith.constant 0 : index
    %9 = vector.load %arg6[%c0_8, %c0_9, %c0_10] : memref<1x32x32xbf16, #tpu.memory_space<vmem>>, vector<1x32x32xbf16>
    %10 = vector.shape_cast %9 : vector<1x32x32xbf16> to vector<32x32xbf16>
    %cst = arith.constant dense<0.000000e+00> : vector<8x32xf32>
    %11 = tpu.matmul %8, %10, %cst {dimension_numbers = #tpu.dot_dimension_numbers<[1], [0], [0], [1], [0, 0, 1, 1], [], []>} : vector<8x32xbf16>, vector<32x32xbf16>, vector<8x32xf32> -> vector<8x32xf32>
    %c0_11 = arith.constant 0 : index
    %c0_12 = arith.constant 0 : index
    %c0_13 = arith.constant 0 : index
    %12 = vector.load %arg7[%c0_11, %c0_12, %c0_13] : memref<1x1x32xf32, #tpu.memory_space<vmem>>, vector<1x1x32xf32>
    %13 = vector.shape_cast %12 : vector<1x1x32xf32> to vector<1x32xf32>
    %14 = vector.broadcast %13 : vector<1x32xf32> to vector<8x32xf32>
    %15 = arith.addf %11, %14 : vector<8x32xf32>
    %cst_14 = arith.constant 0.353553385 : f32
    %16 = vector.broadcast %cst_14 : f32 to vector<8x32xf32>
    %17 = arith.mulf %15, %16 : vector<8x32xf32>
    %c0_15 = arith.constant 0 : index
    %c0_16 = arith.constant 0 : index
    %c0_17 = arith.constant 0 : index
    %18 = vector.load %arg8[%c0_15, %c0_16, %c0_17] : memref<1x32x32xbf16, #tpu.memory_space<vmem>>, vector<1x32x32xbf16>
    %19 = vector.shape_cast %18 : vector<1x32x32xbf16> to vector<32x32xbf16>
    %cst_18 = arith.constant dense<0.000000e+00> : vector<8x32xf32>
    %20 = tpu.matmul %8, %19, %cst_18 {dimension_numbers = #tpu.dot_dimension_numbers<[1], [0], [0], [1], [0, 0, 1, 1], [], []>} : vector<8x32xbf16>, vector<32x32xbf16>, vector<8x32xf32> -> vector<8x32xf32>
    %c0_19 = arith.constant 0 : index
    %c0_20 = arith.constant 0 : index
    %c0_21 = arith.constant 0 : index
    %21 = vector.load %arg9[%c0_19, %c0_20, %c0_21] : memref<1x1x32xf32, #tpu.memory_space<vmem>>, vector<1x1x32xf32>
    %22 = vector.shape_cast %21 : vector<1x1x32xf32> to vector<1x32xf32>
    %23 = vector.broadcast %22 : vector<1x32xf32> to vector<8x32xf32>
    %24 = arith.addf %20, %23 : vector<8x32xf32>
    %c0_22 = arith.constant 0 : index
    %c0_23 = arith.constant 0 : index
    %c0_24 = arith.constant 0 : index
    %25 = vector.load %arg10[%c0_22, %c0_23, %c0_24] : memref<1x32x32xbf16, #tpu.memory_space<vmem>>, vector<1x32x32xbf16>
    %26 = vector.shape_cast %25 : vector<1x32x32xbf16> to vector<32x32xbf16>
    %cst_25 = arith.constant dense<0.000000e+00> : vector<8x32xf32>
    %27 = tpu.matmul %8, %26, %cst_25 {dimension_numbers = #tpu.dot_dimension_numbers<[1], [0], [0], [1], [0, 0, 1, 1], [], []>} : vector<8x32xbf16>, vector<32x32xbf16>, vector<8x32xf32> -> vector<8x32xf32>
    %c0_26 = arith.constant 0 : index
    %c0_27 = arith.constant 0 : index
    %c0_28 = arith.constant 0 : index
    %28 = vector.load %arg11[%c0_26, %c0_27, %c0_28] : memref<1x1x32xf32, #tpu.memory_space<vmem>>, vector<1x1x32xf32>
    %29 = vector.shape_cast %28 : vector<1x1x32xf32> to vector<1x32xf32>
    %30 = vector.broadcast %29 : vector<1x32xf32> to vector<8x32xf32>
    %31 = arith.addf %27, %30 : vector<8x32xf32>
    %32 = arith.truncf %31 : vector<8x32xf32> to vector<8x32xbf16>
    %c0_29 = arith.constant 0 : index
    %c0_30 = arith.constant 0 : index
    %33 = vector.load %arg20[%c0_29, %c0_30] : memref<8x8xf32, #tpu.memory_space<vmem>>, vector<8x8xf32>
    %34 = arith.truncf %33 : vector<8x8xf32> to vector<8x8xbf16>
    %cst_31 = arith.constant dense<0.000000e+00> : vector<8x32xf32>
    %35 = tpu.matmul %34, %32, %cst_31 {dimension_numbers = #tpu.dot_dimension_numbers<[1], [0], [0], [1], [0, 0, 1, 1], [], []>} : vector<8x8xbf16>, vector<8x32xbf16>, vector<8x32xf32> -> vector<8x32xf32>
    %36 = vector.extract_strided_slice %17 {offsets = [0, 0], sizes = [8, 8], strides = [1, 1]} : vector<8x32xf32> to vector<8x8xf32>
    %37 = arith.truncf %36 : vector<8x8xf32> to vector<8x8xbf16>
    %38 = vector.extract_strided_slice %24 {offsets = [0, 0], sizes = [8, 8], strides = [1, 1]} : vector<8x32xf32> to vector<8x8xf32>
    %39 = arith.truncf %38 : vector<8x8xf32> to vector<8x8xbf16>
    %cst_32 = arith.constant dense<0.000000e+00> : vector<8x8xf32>
    %40 = tpu.matmul %37, %39, %cst_32 {dimension_numbers = #tpu.dot_dimension_numbers<[1], [1], [0], [0], [0, 0, 1, 0], [], []>} : vector<8x8xbf16>, vector<8x8xbf16>, vector<8x8xf32> -> vector<8x8xf32>
    %cst_33 = arith.constant 5.000000e-01 : f32
    %41 = vector.broadcast %cst_33 : f32 to vector<8x8xf32>
    %42 = arith.cmpf ogt, %1, %41 : vector<8x8xf32>
    %cst_34 = arith.constant -1.000000e+30 : f32
    %43 = vector.broadcast %cst_34 : f32 to vector<8x8xf32>
    %44 = arith.select %42, %40, %43 : vector<8x8xi1>, vector<8x8xf32>
    %cst_35 = arith.constant 5.000000e-01 : f32
    %45 = vector.broadcast %cst_35 : f32 to vector<8x1xf32>
    %46 = arith.cmpf ogt, %3, %45 : vector<8x1xf32>
    %cst_36 = arith.constant 0.000000e+00 : f32
    %47 = vector.shape_cast %46 : vector<8x1xi1> to vector<8x1xi1>
    %48 = vector.broadcast %47 : vector<8x1xi1> to vector<8x8xi1>
    %49 = vector.broadcast %cst_36 : f32 to vector<8x8xf32>
    %50 = arith.select %48, %49, %44 : vector<8x8xi1>, vector<8x8xf32>
    %cst_37 = arith.constant dense<0xFF800000> : vector<8xf32>
    %51 = vector.multi_reduction <maximumf>, %50, %cst_37 [1] : vector<8x8xf32> to vector<8xf32>
    %52 = vector.shape_cast %51 : vector<8xf32> to vector<8x1xf32>
    %53 = vector.broadcast %52 : vector<8x1xf32> to vector<8x8xf32>
    %54 = arith.subf %50, %53 : vector<8x8xf32>
    %55 = math.exp %54 : vector<8x8xf32>
    %cst_38 = arith.constant dense<0.000000e+00> : vector<8xf32>
    %56 = vector.multi_reduction <add>, %55, %cst_38 [1] : vector<8x8xf32> to vector<8xf32>
    %57 = vector.shape_cast %56 : vector<8xf32> to vector<8x1xf32>
    %58 = vector.broadcast %57 : vector<8x1xf32> to vector<8x8xf32>
    %59 = arith.divf %55, %58 : vector<8x8xf32>
    %60 = arith.truncf %59 : vector<8x8xf32> to vector<8x8xbf16>
    %61 = vector.extract_strided_slice %32 {offsets = [0, 0], sizes = [8, 8], strides = [1, 1]} : vector<8x32xbf16> to vector<8x8xbf16>
    %cst_39 = arith.constant dense<0.000000e+00> : vector<8x8xf32>
    %62 = tpu.matmul %60, %61, %cst_39 {dimension_numbers = #tpu.dot_dimension_numbers<[1], [0], [0], [1], [0, 0, 1, 1], [], []>} : vector<8x8xbf16>, vector<8x8xbf16>, vector<8x8xf32> -> vector<8x8xf32>
    %63 = vector.extract_strided_slice %17 {offsets = [0, 8], sizes = [8, 8], strides = [1, 1]} : vector<8x32xf32> to vector<8x8xf32>
    %64 = arith.truncf %63 : vector<8x8xf32> to vector<8x8xbf16>
    %65 = vector.extract_strided_slice %24 {offsets = [0, 8], sizes = [8, 8], strides = [1, 1]} : vector<8x32xf32> to vector<8x8xf32>
    %66 = arith.truncf %65 : vector<8x8xf32> to vector<8x8xbf16>
    %cst_40 = arith.constant dense<0.000000e+00> : vector<8x8xf32>
    %67 = tpu.matmul %64, %66, %cst_40 {dimension_numbers = #tpu.dot_dimension_numbers<[1], [1], [0], [0], [0, 0, 1, 0], [], []>} : vector<8x8xbf16>, vector<8x8xbf16>, vector<8x8xf32> -> vector<8x8xf32>
    %cst_41 = arith.constant 5.000000e-01 : f32
    %68 = vector.broadcast %cst_41 : f32 to vector<8x8xf32>
    %69 = arith.cmpf ogt, %1, %68 : vector<8x8xf32>
    %cst_42 = arith.constant -1.000000e+30 : f32
    %70 = vector.broadcast %cst_42 : f32 to vector<8x8xf32>
    %71 = arith.select %69, %67, %70 : vector<8x8xi1>, vector<8x8xf32>
    %cst_43 = arith.constant 5.000000e-01 : f32
    %72 = vector.broadcast %cst_43 : f32 to vector<8x1xf32>
    %73 = arith.cmpf ogt, %3, %72 : vector<8x1xf32>
    %cst_44 = arith.constant 0.000000e+00 : f32
    %74 = vector.shape_cast %73 : vector<8x1xi1> to vector<8x1xi1>
    %75 = vector.broadcast %74 : vector<8x1xi1> to vector<8x8xi1>
    %76 = vector.broadcast %cst_44 : f32 to vector<8x8xf32>
    %77 = arith.select %75, %76, %71 : vector<8x8xi1>, vector<8x8xf32>
    %cst_45 = arith.constant dense<0xFF800000> : vector<8xf32>
    %78 = vector.multi_reduction <maximumf>, %77, %cst_45 [1] : vector<8x8xf32> to vector<8xf32>
    %79 = vector.shape_cast %78 : vector<8xf32> to vector<8x1xf32>
    %80 = vector.broadcast %79 : vector<8x1xf32> to vector<8x8xf32>
    %81 = arith.subf %77, %80 : vector<8x8xf32>
    %82 = math.exp %81 : vector<8x8xf32>
    %cst_46 = arith.constant dense<0.000000e+00> : vector<8xf32>
    %83 = vector.multi_reduction <add>, %82, %cst_46 [1] : vector<8x8xf32> to vector<8xf32>
    %84 = vector.shape_cast %83 : vector<8xf32> to vector<8x1xf32>
    %85 = vector.broadcast %84 : vector<8x1xf32> to vector<8x8xf32>
    %86 = arith.divf %82, %85 : vector<8x8xf32>
    %87 = arith.truncf %86 : vector<8x8xf32> to vector<8x8xbf16>
    %88 = vector.extract_strided_slice %32 {offsets = [0, 8], sizes = [8, 8], strides = [1, 1]} : vector<8x32xbf16> to vector<8x8xbf16>
    %cst_47 = arith.constant dense<0.000000e+00> : vector<8x8xf32>
    %89 = tpu.matmul %87, %88, %cst_47 {dimension_numbers = #tpu.dot_dimension_numbers<[1], [0], [0], [1], [0, 0, 1, 1], [], []>} : vector<8x8xbf16>, vector<8x8xbf16>, vector<8x8xf32> -> vector<8x8xf32>
    %90 = vector.extract_strided_slice %17 {offsets = [0, 16], sizes = [8, 8], strides = [1, 1]} : vector<8x32xf32> to vector<8x8xf32>
    %91 = arith.truncf %90 : vector<8x8xf32> to vector<8x8xbf16>
    %92 = vector.extract_strided_slice %24 {offsets = [0, 16], sizes = [8, 8], strides = [1, 1]} : vector<8x32xf32> to vector<8x8xf32>
    %93 = arith.truncf %92 : vector<8x8xf32> to vector<8x8xbf16>
    %cst_48 = arith.constant dense<0.000000e+00> : vector<8x8xf32>
    %94 = tpu.matmul %91, %93, %cst_48 {dimension_numbers = #tpu.dot_dimension_numbers<[1], [1], [0], [0], [0, 0, 1, 0], [], []>} : vector<8x8xbf16>, vector<8x8xbf16>, vector<8x8xf32> -> vector<8x8xf32>
    %cst_49 = arith.constant 5.000000e-01 : f32
    %95 = vector.broadcast %cst_49 : f32 to vector<8x8xf32>
    %96 = arith.cmpf ogt, %1, %95 : vector<8x8xf32>
    %cst_50 = arith.constant -1.000000e+30 : f32
    %97 = vector.broadcast %cst_50 : f32 to vector<8x8xf32>
    %98 = arith.select %96, %94, %97 : vector<8x8xi1>, vector<8x8xf32>
    %cst_51 = arith.constant 5.000000e-01 : f32
    %99 = vector.broadcast %cst_51 : f32 to vector<8x1xf32>
    %100 = arith.cmpf ogt, %3, %99 : vector<8x1xf32>
    %cst_52 = arith.constant 0.000000e+00 : f32
    %101 = vector.shape_cast %100 : vector<8x1xi1> to vector<8x1xi1>
    %102 = vector.broadcast %101 : vector<8x1xi1> to vector<8x8xi1>
    %103 = vector.broadcast %cst_52 : f32 to vector<8x8xf32>
    %104 = arith.select %102, %103, %98 : vector<8x8xi1>, vector<8x8xf32>
    %cst_53 = arith.constant dense<0xFF800000> : vector<8xf32>
    %105 = vector.multi_reduction <maximumf>, %104, %cst_53 [1] : vector<8x8xf32> to vector<8xf32>
    %106 = vector.shape_cast %105 : vector<8xf32> to vector<8x1xf32>
    %107 = vector.broadcast %106 : vector<8x1xf32> to vector<8x8xf32>
    %108 = arith.subf %104, %107 : vector<8x8xf32>
    %109 = math.exp %108 : vector<8x8xf32>
    %cst_54 = arith.constant dense<0.000000e+00> : vector<8xf32>
    %110 = vector.multi_reduction <add>, %109, %cst_54 [1] : vector<8x8xf32> to vector<8xf32>
    %111 = vector.shape_cast %110 : vector<8xf32> to vector<8x1xf32>
    %112 = vector.broadcast %111 : vector<8x1xf32> to vector<8x8xf32>
    %113 = arith.divf %109, %112 : vector<8x8xf32>
    %114 = arith.truncf %113 : vector<8x8xf32> to vector<8x8xbf16>
    %115 = vector.extract_strided_slice %32 {offsets = [0, 16], sizes = [8, 8], strides = [1, 1]} : vector<8x32xbf16> to vector<8x8xbf16>
    %cst_55 = arith.constant dense<0.000000e+00> : vector<8x8xf32>
    %116 = tpu.matmul %114, %115, %cst_55 {dimension_numbers = #tpu.dot_dimension_numbers<[1], [0], [0], [1], [0, 0, 1, 1], [], []>} : vector<8x8xbf16>, vector<8x8xbf16>, vector<8x8xf32> -> vector<8x8xf32>
    %117 = vector.extract_strided_slice %17 {offsets = [0, 24], sizes = [8, 8], strides = [1, 1]} : vector<8x32xf32> to vector<8x8xf32>
    %118 = arith.truncf %117 : vector<8x8xf32> to vector<8x8xbf16>
    %119 = vector.extract_strided_slice %24 {offsets = [0, 24], sizes = [8, 8], strides = [1, 1]} : vector<8x32xf32> to vector<8x8xf32>
    %120 = arith.truncf %119 : vector<8x8xf32> to vector<8x8xbf16>
    %cst_56 = arith.constant dense<0.000000e+00> : vector<8x8xf32>
    %121 = tpu.matmul %118, %120, %cst_56 {dimension_numbers = #tpu.dot_dimension_numbers<[1], [1], [0], [0], [0, 0, 1, 0], [], []>} : vector<8x8xbf16>, vector<8x8xbf16>, vector<8x8xf32> -> vector<8x8xf32>
    %cst_57 = arith.constant 5.000000e-01 : f32
    %122 = vector.broadcast %cst_57 : f32 to vector<8x8xf32>
    %123 = arith.cmpf ogt, %1, %122 : vector<8x8xf32>
    %cst_58 = arith.constant -1.000000e+30 : f32
    %124 = vector.broadcast %cst_58 : f32 to vector<8x8xf32>
    %125 = arith.select %123, %121, %124 : vector<8x8xi1>, vector<8x8xf32>
    %cst_59 = arith.constant 5.000000e-01 : f32
    %126 = vector.broadcast %cst_59 : f32 to vector<8x1xf32>
    %127 = arith.cmpf ogt, %3, %126 : vector<8x1xf32>
    %cst_60 = arith.constant 0.000000e+00 : f32
    %128 = vector.shape_cast %127 : vector<8x1xi1> to vector<8x1xi1>
    %129 = vector.broadcast %128 : vector<8x1xi1> to vector<8x8xi1>
    %130 = vector.broadcast %cst_60 : f32 to vector<8x8xf32>
    %131 = arith.select %129, %130, %125 : vector<8x8xi1>, vector<8x8xf32>
    %cst_61 = arith.constant dense<0xFF800000> : vector<8xf32>
    %132 = vector.multi_reduction <maximumf>, %131, %cst_61 [1] : vector<8x8xf32> to vector<8xf32>
    %133 = vector.shape_cast %132 : vector<8xf32> to vector<8x1xf32>
    %134 = vector.broadcast %133 : vector<8x1xf32> to vector<8x8xf32>
    %135 = arith.subf %131, %134 : vector<8x8xf32>
    %136 = math.exp %135 : vector<8x8xf32>
    %cst_62 = arith.constant dense<0.000000e+00> : vector<8xf32>
    %137 = vector.multi_reduction <add>, %136, %cst_62 [1] : vector<8x8xf32> to vector<8xf32>
    %138 = vector.shape_cast %137 : vector<8xf32> to vector<8x1xf32>
    %139 = vector.broadcast %138 : vector<8x1xf32> to vector<8x8xf32>
    %140 = arith.divf %136, %139 : vector<8x8xf32>
    %141 = arith.truncf %140 : vector<8x8xf32> to vector<8x8xbf16>
    %142 = vector.extract_strided_slice %32 {offsets = [0, 24], sizes = [8, 8], strides = [1, 1]} : vector<8x32xbf16> to vector<8x8xbf16>
    %cst_63 = arith.constant dense<0.000000e+00> : vector<8x8xf32>
    %143 = tpu.matmul %141, %142, %cst_63 {dimension_numbers = #tpu.dot_dimension_numbers<[1], [0], [0], [1], [0, 0, 1, 1], [], []>} : vector<8x8xbf16>, vector<8x8xbf16>, vector<8x8xf32> -> vector<8x8xf32>
    %144 = tpu.concatenate %62, %89, %116, %143 in 1 : vector<8x8xf32>, vector<8x8xf32>, vector<8x8xf32>, vector<8x8xf32> -> vector<8x32xf32>
    %145 = arith.addf %144, %35 : vector<8x32xf32>
    %cst_64 = arith.constant 5.000000e-01 : f32
    %146 = vector.broadcast %cst_64 : f32 to vector<8x32xf32>
    %147 = arith.mulf %146, %145 : vector<8x32xf32>
    %148 = arith.truncf %147 : vector<8x32xf32> to vector<8x32xbf16>
    %c0_65 = arith.constant 0 : index
    %c0_66 = arith.constant 0 : index
    %c0_67 = arith.constant 0 : index
    %149 = vector.load %arg12[%c0_65, %c0_66, %c0_67] : memref<1x32x32xbf16, #tpu.memory_space<vmem>>, vector<1x32x32xbf16>
    %150 = vector.shape_cast %149 : vector<1x32x32xbf16> to vector<32x32xbf16>
    %cst_68 = arith.constant dense<0.000000e+00> : vector<8x32xf32>
    %151 = tpu.matmul %148, %150, %cst_68 {dimension_numbers = #tpu.dot_dimension_numbers<[1], [0], [0], [1], [0, 0, 1, 1], [], []>} : vector<8x32xbf16>, vector<32x32xbf16>, vector<8x32xf32> -> vector<8x32xf32>
    %c0_69 = arith.constant 0 : index
    %c0_70 = arith.constant 0 : index
    %c0_71 = arith.constant 0 : index
    %152 = vector.load %arg13[%c0_69, %c0_70, %c0_71] : memref<1x1x32xf32, #tpu.memory_space<vmem>>, vector<1x1x32xf32>
    %153 = vector.shape_cast %152 : vector<1x1x32xf32> to vector<1x32xf32>
    %154 = vector.broadcast %153 : vector<1x32xf32> to vector<8x32xf32>
    %155 = arith.addf %151, %154 : vector<8x32xf32>
    %156 = arith.addf %7, %155 : vector<8x32xf32>
    %cst_72 = arith.constant dense<0.000000e+00> : vector<8xf32>
    %157 = vector.multi_reduction <add>, %156, %cst_72 [1] : vector<8x32xf32> to vector<8xf32>
    %158 = vector.shape_cast %157 : vector<8xf32> to vector<8x1xf32>
    %cst_73 = arith.constant 3.200000e+01 : f32
    %159 = vector.broadcast %cst_73 : f32 to vector<8x1xf32>
    %160 = arith.divf %158, %159 : vector<8x1xf32>
    %161 = vector.broadcast %160 : vector<8x1xf32> to vector<8x32xf32>
    %162 = arith.subf %156, %161 : vector<8x32xf32>
    %163 = arith.mulf %162, %162 : vector<8x32xf32>
    %cst_74 = arith.constant dense<0.000000e+00> : vector<8xf32>
    %164 = vector.multi_reduction <add>, %163, %cst_74 [1] : vector<8x32xf32> to vector<8xf32>
    %165 = vector.shape_cast %164 : vector<8xf32> to vector<8x1xf32>
    %cst_75 = arith.constant 3.200000e+01 : f32
    %166 = vector.broadcast %cst_75 : f32 to vector<8x1xf32>
    %167 = arith.divf %165, %166 : vector<8x1xf32>
    %168 = vector.broadcast %160 : vector<8x1xf32> to vector<8x32xf32>
    %169 = arith.subf %156, %168 : vector<8x32xf32>
    %cst_76 = arith.constant 9.99999974E-6 : f32
    %170 = vector.broadcast %cst_76 : f32 to vector<8x1xf32>
    %171 = arith.addf %167, %170 : vector<8x1xf32>
    %172 = math.rsqrt %171 : vector<8x1xf32>
    %173 = vector.broadcast %172 : vector<8x1xf32> to vector<8x32xf32>
    %174 = arith.mulf %169, %173 : vector<8x32xf32>
    %c0_77 = arith.constant 0 : index
    %c0_78 = arith.constant 0 : index
    %c0_79 = arith.constant 0 : index
    %175 = vector.load %arg14[%c0_77, %c0_78, %c0_79] : memref<1x1x32xf32, #tpu.memory_space<vmem>>, vector<1x1x32xf32>
    %176 = vector.shape_cast %175 : vector<1x1x32xf32> to vector<1x32xf32>
    %177 = vector.broadcast %176 : vector<1x32xf32> to vector<8x32xf32>
    %178 = arith.mulf %174, %177 : vector<8x32xf32>
    %c0_80 = arith.constant 0 : index
    %c0_81 = arith.constant 0 : index
    %c0_82 = arith.constant 0 : index
    %179 = vector.load %arg15[%c0_80, %c0_81, %c0_82] : memref<1x1x32xf32, #tpu.memory_space<vmem>>, vector<1x1x32xf32>
    %180 = vector.shape_cast %179 : vector<1x1x32xf32> to vector<1x32xf32>
    %181 = vector.broadcast %180 : vector<1x32xf32> to vector<8x32xf32>
    %182 = arith.addf %178, %181 : vector<8x32xf32>
    %c0_83 = arith.constant 0 : index
    %c0_84 = arith.constant 0 : index
    %183 = vector.load %arg19[%c0_83, %c0_84] : memref<8x32xf32, #tpu.memory_space<vmem>>, vector<8x32xf32>
    tpu.vector_store %arg19[%c0_83, %c0_84], %182 {strides = array<i32>} : memref<8x32xf32, #tpu.memory_space<vmem>>, vector<8x32xf32>,
    %c3_i32 = arith.constant 3 : i32
    %184 = arith.cmpi eq, %arg1, %c3_i32 : i32
    %185 = arith.extui %184 : i1 to i32
    %c0_i32_85 = arith.constant 0 : i32
    %186 = arith.cmpi ne, %185, %c0_i32_85 : i32
    scf.if %186 {
      %187 = vector.extract_strided_slice %182 {offsets = [0, 0], sizes = [1, 32], strides = [1, 1]} : vector<8x32xf32> to vector<1x32xf32>
      %cst_86 = arith.constant dense<0.000000e+00> : vector<1xf32>
      %188 = vector.multi_reduction <add>, %187, %cst_86 [1] : vector<1x32xf32> to vector<1xf32>
      %189 = vector.shape_cast %188 : vector<1xf32> to vector<1x1xf32>
      %cst_87 = arith.constant 3.200000e+01 : f32
      %190 = vector.broadcast %cst_87 : f32 to vector<1x1xf32>
      %191 = arith.divf %189, %190 : vector<1x1xf32>
      %192 = vector.broadcast %191 : vector<1x1xf32> to vector<1x32xf32>
      %193 = arith.subf %187, %192 : vector<1x32xf32>
      %194 = arith.mulf %193, %193 : vector<1x32xf32>
      %cst_88 = arith.constant dense<0.000000e+00> : vector<1xf32>
      %195 = vector.multi_reduction <add>, %194, %cst_88 [1] : vector<1x32xf32> to vector<1xf32>
      %196 = vector.shape_cast %195 : vector<1xf32> to vector<1x1xf32>
      %cst_89 = arith.constant 3.200000e+01 : f32
      %197 = vector.broadcast %cst_89 : f32 to vector<1x1xf32>
      %198 = arith.divf %196, %197 : vector<1x1xf32>
      %199 = vector.broadcast %191 : vector<1x1xf32> to vector<1x32xf32>
      %200 = arith.subf %187, %199 : vector<1x32xf32>
      %cst_90 = arith.constant 9.99999974E-6 : f32
      %201 = vector.broadcast %cst_90 : f32 to vector<1x1xf32>
      %202 = arith.addf %198, %201 : vector<1x1xf32>
      %203 = math.rsqrt %202 : vector<1x1xf32>
      %204 = vector.broadcast %203 : vector<1x1xf32> to vector<1x32xf32>
      %205 = arith.mulf %200, %204 : vector<1x32xf32>
      %c0_91 = arith.constant 0 : index
      %c0_92 = arith.constant 0 : index
      %c0_93 = arith.constant 0 : index
      %206 = vector.load %arg16[%c0_91, %c0_92, %c0_93] : memref<1x1x32xf32, #tpu.memory_space<vmem>>, vector<1x1x32xf32>
      %207 = vector.shape_cast %206 : vector<1x1x32xf32> to vector<1x32xf32>
      %208 = arith.mulf %205, %207 : vector<1x32xf32>
      %c0_94 = arith.constant 0 : index
      %c0_95 = arith.constant 0 : index
      %c0_96 = arith.constant 0 : index
      %209 = vector.load %arg17[%c0_94, %c0_95, %c0_96] : memref<1x1x32xf32, #tpu.memory_space<vmem>>, vector<1x1x32xf32>
      %210 = vector.shape_cast %209 : vector<1x1x32xf32> to vector<1x32xf32>
      %211 = arith.addf %208, %210 : vector<1x32xf32>
      %c0_97 = arith.constant 0 : index
      %c0_98 = arith.constant 0 : index
      %c0_99 = arith.constant 0 : index
      %212 = vector.load %arg18[%c0_97, %c0_98, %c0_99] : memref<1x1x32xf32, #tpu.memory_space<vmem>>, vector<1x1x32xf32>
      %213 = vector.shape_cast %212 : vector<1x1x32xf32> to vector<1x32xf32>
      %214 = vector.shape_cast %211 : vector<1x32xf32> to vector<1x1x32xf32>
      tpu.vector_store %arg18[%c0_97, %c0_98, %c0_99], %214 {strides = array<i32>} : memref<1x1x32xf32, #tpu.memory_space<vmem>>, vector<1x1x32xf32>,
    } else {
    }
    return
  }
  func.func @transform_0(%arg0: i32, %arg1: i32) -> (i32, i32, i32) {
    %c0_i32 = arith.constant 0 : i32
    %c0_i32_0 = arith.constant 0 : i32
    %c0_i32_1 = arith.constant 0 : i32
    return %arg0, %c0_i32, %c0_i32_0 : i32, i32, i32
  }
  func.func @transform_1(%arg0: i32, %arg1: i32) -> (i32, i32, i32) {
    %c0_i32 = arith.constant 0 : i32
    %c0_i32_0 = arith.constant 0 : i32
    %c0_i32_1 = arith.constant 0 : i32
    return %arg0, %c0_i32, %c0_i32_0 : i32, i32, i32
  }
  func.func @transform_2(%arg0: i32, %arg1: i32) -> (i32, i32, i32) {
    %c0_i32 = arith.constant 0 : i32
    %c0_i32_0 = arith.constant 0 : i32
    %c0_i32_1 = arith.constant 0 : i32
    return %arg0, %c0_i32, %c0_i32_0 : i32, i32, i32
  }
  func.func @transform_3(%arg0: i32, %arg1: i32) -> (i32, i32, i32) {
    %c0_i32 = arith.constant 0 : i32
    %c0_i32_0 = arith.constant 0 : i32
    %c0_i32_1 = arith.constant 0 : i32
    return %arg0, %c0_i32, %c0_i32_0 : i32, i32, i32
  }
  func.func @transform_4(%arg0: i32, %arg1: i32) -> (i32, i32, i32) {
    %c0_i32 = arith.constant 0 : i32
    %c0_i32_0 = arith.constant 0 : i32
    %c0_i32_1 = arith.constant 0 : i32
    return %arg1, %c0_i32, %c0_i32_0 : i32, i32, i32
  }
  func.func @transform_5(%arg0: i32, %arg1: i32) -> (i32, i32, i32) {
    %c0_i32 = arith.constant 0 : i32
    %c0_i32_0 = arith.constant 0 : i32
    %c0_i32_1 = arith.constant 0 : i32
    return %arg1, %c0_i32, %c0_i32_0 : i32, i32, i32
  }
  func.func @transform_6(%arg0: i32, %arg1: i32) -> (i32, i32, i32) {
    %c0_i32 = arith.constant 0 : i32
    %c0_i32_0 = arith.constant 0 : i32
    %c0_i32_1 = arith.constant 0 : i32
    return %arg1, %c0_i32, %c0_i32_0 : i32, i32, i32
  }
  func.func @transform_7(%arg0: i32, %arg1: i32) -> (i32, i32, i32) {
    %c0_i32 = arith.constant 0 : i32
    %c0_i32_0 = arith.constant 0 : i32
    %c0_i32_1 = arith.constant 0 : i32
    return %arg1, %c0_i32, %c0_i32_0 : i32, i32, i32
  }
  func.func @transform_8(%arg0: i32, %arg1: i32) -> (i32, i32, i32) {
    %c0_i32 = arith.constant 0 : i32
    %c0_i32_0 = arith.constant 0 : i32
    %c0_i32_1 = arith.constant 0 : i32
    return %arg1, %c0_i32, %c0_i32_0 : i32, i32, i32
  }
  func.func @transform_9(%arg0: i32, %arg1: i32) -> (i32, i32, i32) {
    %c0_i32 = arith.constant 0 : i32
    %c0_i32_0 = arith.constant 0 : i32
    %c0_i32_1 = arith.constant 0 : i32
    return %arg1, %c0_i32, %c0_i32_0 : i32, i32, i32
  }
  func.func @transform_10(%arg0: i32, %arg1: i32) -> (i32, i32, i32) {
    %c0_i32 = arith.constant 0 : i32
    %c0_i32_0 = arith.constant 0 : i32
    %c0_i32_1 = arith.constant 0 : i32
    return %arg1, %c0_i32, %c0_i32_0 : i32, i32, i32
  }
  func.func @transform_11(%arg0: i32, %arg1: i32) -> (i32, i32, i32) {
    %c0_i32 = arith.constant 0 : i32
    %c0_i32_0 = arith.constant 0 : i32
    %c0_i32_1 = arith.constant 0 : i32
    return %arg1, %c0_i32, %c0_i32_0 : i32, i32, i32
  }
  func.func @transform_12(%arg0: i32, %arg1: i32) -> (i32, i32, i32) {
    %c0_i32 = arith.constant 0 : i32
    %c0_i32_0 = arith.constant 0 : i32
    %c0_i32_1 = arith.constant 0 : i32
    return %arg1, %c0_i32, %c0_i32_0 : i32, i32, i32
  }
  func.func @transform_13(%arg0: i32, %arg1: i32) -> (i32, i32, i32) {
    %c0_i32 = arith.constant 0 : i32
    %c0_i32_0 = arith.constant 0 : i32
    %c0_i32_1 = arith.constant 0 : i32
    return %arg1, %c0_i32, %c0_i32_0 : i32, i32, i32
  }
  func.func @transform_14(%arg0: i32, %arg1: i32) -> (i32, i32, i32) {
    %c0_i32 = arith.constant 0 : i32
    %c0_i32_0 = arith.constant 0 : i32
    %c0_i32_1 = arith.constant 0 : i32
    %c0_i32_2 = arith.constant 0 : i32
    return %c0_i32, %c0_i32_0, %c0_i32_1 : i32, i32, i32
  }
  func.func @transform_15(%arg0: i32, %arg1: i32) -> (i32, i32, i32) {
    %c0_i32 = arith.constant 0 : i32
    %c0_i32_0 = arith.constant 0 : i32
    %c0_i32_1 = arith.constant 0 : i32
    %c0_i32_2 = arith.constant 0 : i32
    return %c0_i32, %c0_i32_0, %c0_i32_1 : i32, i32, i32
  }
  func.func @transform_16(%arg0: i32, %arg1: i32) -> (i32, i32, i32) {
    %c0_i32 = arith.constant 0 : i32
    %c0_i32_0 = arith.constant 0 : i32
    %c0_i32_1 = arith.constant 0 : i32
    return %arg0, %c0_i32, %c0_i32_0 : i32, i32, i32
  }
}

</mosaic_0001>

<bundles_post_ra>
// kernel: tpu_custom_call.1
= control target key start
LH: loop header
LB: loop body
LE: loop exit
PB: predicated region body
PF: predicated region fallthrough
CT: control target
= control target key end

     0   :  { %s3090_s0 = inlined_call_operand.vmem [shape: f32[4,8,32], index: 0, kind: input, shape index: {}]   ;;  %s3091_s1 = inlined_call_operand.hbm [shape: f32[4,8,8], index: 1, kind: input, shape index: {}]   ;;  %s3092_s2 = inlined_call_operand.vmem [shape: f32[4,8,1], index: 2, kind: input, shape index: {}]   ;;  %s3093_s3 = inlined_call_operand.hbm [shape: f32[4,8,8], index: 3, kind: input, shape index: {}]   ;;  %s3094_s4 = inlined_call_operand.hbm [shape: bf16[4,32,32], index: 4, kind: input, shape index: {}]   ;;  %s3095_s5 = inlined_call_operand.vmem [shape: f32[4,1,32], index: 5, kind: input, shape index: {}]   ;;  %s3096_s6 = inlined_call_operand.hbm [shape: bf16[4,32,32], index: 6, kind: input, shape index: {}]   ;;  %s3097_s7 = inlined_call_operand.vmem [shape: f32[4,1,32], index: 7, kind: input, shape index: {}]   ;;  %s3098_s8 = inlined_call_operand.hbm [shape: bf16[4,32,32], index: 8, kind: input, shape index: {}]   ;;  %s3099_s9 = inlined_call_operand.vmem [shape: f32[4,1,32], index: 9, kind: input, shape index: {}]   ;;  %s3100_s10 = inlined_call_operand.hbm [shape: bf16[4,32,32], index: 10, kind: input, shape index: {}]   ;;  %s3101_s11 = inlined_call_operand.hbm [shape: f32[4,1,32], index: 11, kind: input, shape index: {}]   ;;  %s3102_s12 = inlined_call_operand.hbm [shape: f32[4,1,32], index: 12, kind: input, shape index: {}]   ;;  %s3103_s13 = inlined_call_operand.vmem [shape: f32[4,1,32], index: 13, kind: input, shape index: {}]   ;;  %s3104_s14 = inlined_call_operand.vmem [shape: f32[1,1,32], index: 14, kind: input, shape index: {}]   ;;  %s3105_s15 = inlined_call_operand.vmem [shape: f32[1,1,32], index: 15, kind: input, shape index: {}]   ;;  %s3106_s16 = inlined_call_operand.hbm [shape: f32[4,1,32], index: 16, kind: output, shape index: {}]  }
   0x1   :  { %3131 = sst [smem:[#allocation41_spill]] %s3090_s0 }
   0x2   :  { %3132 = sst [smem:[#allocation42_spill]] %s3091_s1 }
   0x3   :  { %3133 = sst [smem:[#allocation43_spill]] %s3092_s2 }
   0x4   :  { %3134 = sst [smem:[#allocation44_spill]] %s3093_s3 }
   0x5   :  { %3135 = sst [smem:[#allocation45_spill]] %s3094_s4 }
   0x6   :  { %3136 = sst [smem:[#allocation46_spill]] %s3095_s5 }
   0x7   :  { %3137 = sst [smem:[#allocation47_spill]] %s3096_s6 }
   0x8   :  { %3138 = sst [smem:[#allocation48_spill]] %s3097_s7 }
   0x9   :  { %3139 = sst [smem:[#allocation49_spill]] %s3098_s8 }
   0xa   :  { %3140 = sst [smem:[#allocation50_spill]] %s3099_s9 }
   0xb   :  { %3141 = sst [smem:[#allocation51_spill]] %s3100_s10 }
   0xc   :  { %3142 = sst [smem:[#allocation52_spill]] %s3101_s11 }
   0xd   :  { %3143 = sst [smem:[#allocation53_spill]] %s3102_s12 }
   0xe   :  { %3144 = sst [smem:[#allocation54_spill]] %s3103_s13 }
   0xf   :  { %3145 = sst [smem:[#allocation55_spill]] %s3104_s14 }
  0x10   :  { %3146 = sst [smem:[#allocation56_spill]] %s3105_s15 }
  0x11   :  { %3147 = sst [smem:[#allocation57_spill]] %s3106_s16 }
  0x12   :  { %21 = vsyncpa [#allocation5], 0 }
  0x13   :  { %23 = vsyncpa [#allocation5 + $0x1], 0 }
  0x14   :  { %24 = vsyncpa [#allocation8], 0 }
  0x15   :  { %26 = vsyncpa [#allocation8 + $0x1], 0 }
  0x16   :  { %27 = vsyncpa [#allocation11], 0 }
  0x17   :  { %29 = vsyncpa [#allocation11 + $0x1], 0 }
  0x18   :  { %30 = vsyncpa [#allocation14], 0 }
  0x19   :  { %32 = vsyncpa [#allocation14 + $0x1], 0 }
  0x1a   :  { %33 = vsyncpa [#allocation17], 0 }
  0x1b   :  { %35 = vsyncpa [#allocation17 + $0x1], 0 }
  0x1c   :  { %36 = vsyncpa [#allocation6], 0 }
  0x1d   :  { %38 = vsyncpa [#allocation6 + $0x1], 0  ;;  %s2549_s21 = smov 0   ;;  %s2551_s22 = smov 0  }
  0x1e   :  { %s2553_s23 = smov 0   ;;  %s2555_s24 = smov 0  }
  0x1f   :  { %s2557_s25 = smov 0   ;;  %s2559_s26 = smov 0  }
  0x20   :  { %s2561_s27 = smov 0   ;;  %s2563_s28 = smov 0  }
  0x21   :  { %s2565_s29 = smov 0   ;;  %s2567_s30 = smov 0  }
  0x22   :  { %s2569_s0 = smov 0  }
  0x23 LB: > { %3148 = sst [smem:[#allocation26_spill]] %s2415_s22  ;;  %s2605_s17 = sadd.s32 4294967295, %s2451_s0   ;;  %s2451_s0 = sphi %s2569_s0, %s44_s0   ;;  %s2447_s30 = sphi %s2567_s30, %s3233_s30   ;;  %s2443_s29 = sphi %s2565_s29, %s3232_s29   ;;  %s2439_s28 = sphi %s2563_s28, %s3231_s28   ;;  %s2435_s27 = sphi %s2561_s27, %s3230_s27   ;;  %s2431_s26 = sphi %s2559_s26, %s3229_s26   ;;  %s2427_s25 = sphi %s2557_s25, %s3228_s25   ;;  %s2423_s24 = sphi %s2555_s24, %s3227_s24   ;;  %s2419_s23 = sphi %s2553_s23, %s3223_s23   ;;  %s2415_s22 = sphi %s2551_s22, %s3222_s22   ;;  %s2411_s21 = sphi %s2549_s21, %s3221_s21  }
  0x24   : > { %3149 = sst [smem:[#allocation27_spill]] %s2419_s23  ;;  %s1798_s18 = sadd.s32 4294967294, %s2451_s0  }
  0x25   : > { %3150 = sst [smem:[#allocation28_spill]] %s2423_s24  ;;  %s53_s19 = sadd.s32 1, %s2443_s29 }
  0x26   : > { %3151 = sst [smem:[#allocation29_spill]] %s2435_s27  ;;  %s56_s20 = sadd.s32 1, %s2447_s30 }
  0x27   : > { %3152 = sst [smem:[#allocation30_spill]] %s2439_s28  ;;  %p54_p0 = scmp.ge.s32.totalorder %s53_s19, 4 }
  0x28   : > { %3153 = sst [smem:[#allocation31_spill]] %s2451_s0  ;;  %s89_s16 = sadd.s32 1, %s2431_s26 }
  0x29   : > { %3154 = sst [smem:[#allocation32_spill]] %s2605_s17  ;;  %p96_p1 = scmp.ne.s32.totalorder %s2431_s26, %s2427_s25 }
  0x2a   : > { %p97_p2 = scmp.eq.s32.totalorder %s2451_s0, 0  ;;  %s3235_s19 = smov (%p54_p0, %s53_s19), 0 }
  0x2b   : > { %3155 = sst [smem:[#allocation33_spill]] %s3235_s19  ;;  %s3237_s20 = smov (!%p54_p0, %s56_s20), %s2447_s30 }
  0x2c   : > { %p2622_p3 = por %p97_p2, %p96_p1  ;;  %p3109_p4 = scmp.ne.s32.totalorder %s2427_s25, %s2423_s24 }
  0x2d   : > { %p58_p5 = scmp.ge.s32.totalorder %s3237_s20, 4  ;;  %p103_p6 = scmp.eq.s32.totalorder %s2605_s17, 0 }
  0x2e   : > { %s164_s14 = ssub.s32 %s2443_s29, %s3235_s19  ;;  %s167_s13 = sadd.s32 1, %s2419_s23 }
  0x2f   : > { %s3239_s20 = smov (%p58_p5, %s3237_s20), 0  ;;  %p2639_p7 = por %p103_p6, %p3109_p4 }
  0x30   : > { %3157 = sst [smem:[#allocation34_spill]] %s3239_s20  ;;  %p165_p8 = scmp.eq.s32.totalorder %s164_s14, 0 }
  0x31   : > { %s3158_s9 = scalar_select %p2639_p7, 1, 0 }
  0x32   : > { %s86_s7 = ssub.s32 %s2447_s30, %s3239_s20  ;;  %p174_p9 = scmp.ne.s32.totalorder %s2419_s23, %s2415_s22 }
  0x33   : > { %3159 = sst [smem:[#allocation35_spill]] %s3158_s9  ;;  %p87_p10 = scmp.eq.s32.totalorder %s86_s7, 0 }
  0x34   : > { %p180_p11 = scmp.ne.s32.totalorder %s2415_s22, %s2411_s21  ;;  %p2657_p12 = por %p174_p9, %p97_p2 }
  0x35   : > { %s2650_s19 = scalar_select %p165_p8, %s2419_s23, %s167_s13  }
  0x36   : > { %s2653_s5 = scalar_select %p87_p10, %s2431_s26, %s89_s16  }
  0x37   : > { %3160 = sst [smem:[#allocation36_spill]] %s2650_s19  ;;  %p2663_p13 = por %p180_p11, %p103_p6 }
  0x38   : > { %3161 = sst [smem:[#allocation37_spill]] %s2653_s5  ;;  %p480_p0 = scmp.eq.s32.totalorder %s2605_s17, 15 }
  0x39   : > { %s3163_s14 = scalar_select %p2663_p13, 1, 0 }
  0x3a   : > { %p486_p5 = scmp.eq.s32.totalorder %s1798_s18, 15  ;;  %p1934_p4 = scmp.lt.s32.totalorder %s2451_s0, 16 }
  0x3b   : > { %3164 = sst [smem:[#allocation38_spill]] %s3163_s14  ;;  %p2672_p8 = por %p480_p0, %p96_p1 }
  0x3c   : > { %p3167_p10 = scmp.ne.s32.totalorder %s2427_s25, %s2423_s24  ;;  %s3113_s16 = sand.u32 1, %s2431_s26  }
  0x3d   : > { %s3165_s7 = scalar_select %p2672_p8, 1, 0 }
  0x3e   : > { %p2679_p2 = por %p486_p5, %p3167_p10  ;;  %s3119_s21 = sshll.u32 %s2447_s30, 3 }
  0x3f   : > { %3166 = sst [smem:[#allocation39_spill]] %s3165_s7  ;;  %s2687_s20 = sshll.u32 %s3113_s16, 3 }
  0x40   : > { %s3168_s13 = scalar_select %p2679_p2, 1, 0 }
  0x41   : > { %p2693_p1 = pnand %p1934_p4, %p2622_p3  ;;  %s2698_s5 = sand.u32 1, %s2451_s0  }
  0x42   : > { %3169 = sst [smem:[#allocation40_spill]] %s3168_s13  ;;  %s549_s16 = scalar_lea.vmem [#allocation7], %s2687_s20 }
  0x43   : > { %s3171_s3 = sld [smem:[#allocation44_spill]]  ;;  %s557_s7 = sshll.u32 %s549_s16, 4  ;;  %s558_s7 = int_to_ptr.vmem [resolvable:$true] %s557_s7 }
  0x44   : > { %p2710_p3 = pnand %p1934_p4, %p2657_p12  ;;  %s3118_s28 = scalar_lea.sflag [#allocation8], %s2698_s5 }
  0x45   : > { %p1817_p6 = scmp.ge.s32.totalorder %s2451_s0, 1  ;;  %p708_p9 = scmp.lt.s32.totalorder %s2451_s0, 17 }
  0x46   : > { %s2722_s19 = sand.u32 1, %s2419_s23   ;;  %s2728_s2 = sshll.u32 %s2443_s29, 4 }
  0x47   : > { %p2730_p4 = pnand %p1817_p6, %p708_p9  ;;  %s3174_s6 = sld [smem:[#allocation47_spill]] }
  0x48   : > { %s3127_s23 = scalar_lea.sflag [#allocation11], %s2698_s5  ;;  %s2453_s0 = smov 64  }
  0x49   : > { %s553_s24 = scalar_lea.hbm %s3171_s3, %s3119_s21  ;;  %s2454_s14 = smov 4  }
  0x4a   : > { %s555_s15 = sshll.u32 %s553_s24, 4  ;;  %s2725_s24 = sshll.u32 %s2722_s19, 4  ;;  %s556_s15 = int_to_ptr.hbm [resolvable:$true] %s555_s15 }
  0x4b   : > { %1911 = dma.hbm_to_vmem [thread:$0]  (!%p2693_p1), %s556_s15, 128, %s558_s7, %s3118_s28  }
  0x4c   : > { %s596_s28 = scalar_lea.vmem [#allocation10], %s2725_s24  ;;  %s3175_s10 = sld [smem:[#allocation51_spill]] }
  0x4d   : > { %s601_s15 = scalar_lea.hbm %s3174_s6, %s2728_s2  ;;  %s604_s21 = sshll.u32 %s596_s28, 4  ;;  %s605_s21 = int_to_ptr.vmem [resolvable:$true] %s604_s21 }
  0x4e   : > { %s602_s3 = sshll.u32 %s601_s15, 4  ;;  %s652_s15 = scalar_lea.vmem [#allocation13], %s2725_s24  ;;  %s603_s3 = int_to_ptr.hbm [resolvable:$true] %s602_s3 }
  0x4f   : > { %1917 = dma.hbm_to_vmem [thread:$0]  (!%p2710_p3), %s603_s3, 256, %s605_s21, %s3127_s23, %s2453_s0, %s2453_s0, %s2454_s14  }
  0x50   : > { %s660_s6 = sshll.u32 %s652_s15, 4  ;;  %s3130_s17 = scalar_lea.sflag [#allocation14], %s2698_s5  ;;  %s661_s6 = int_to_ptr.vmem [resolvable:$true] %s660_s6 }
  0x51   : > { %s3176_s3 = sshll.u32 %s2447_s30, 3  ;;  %s3177_s1 = sld [smem:[#allocation42_spill]] }
  0x52   : > { %s657_s28 = scalar_lea.hbm %s3175_s10, %s2728_s2  ;;  %s3178_s10 = sand.u32 1, %s2431_s26  }
  0x53   : > { %s658_s22 = sshll.u32 %s657_s28, 4  ;;  %s523_s28 = scalar_lea.vmem [#allocation4], %s2687_s20  ;;  %s659_s22 = int_to_ptr.hbm [resolvable:$true] %s658_s22 }
  0x54   : > { %1923 = dma.hbm_to_vmem [thread:$0]  (!%p2710_p3), %s659_s22, 256, %s661_s6, %s3130_s17, %s2453_s0, %s2453_s0, %s2454_s14  }
  0x55   : > { %s531_s23 = sshll.u32 %s523_s28, 4  ;;  %s520_s9 = scalar_lea.sflag [#allocation5], %s3178_s10  ;;  %s532_s23 = int_to_ptr.vmem [resolvable:$true] %s531_s23 }
  0x56   : > { %s3179_s4 = sld [smem:[#allocation45_spill]]  ;;  %s3180_s10 = scalar_lea.sflag [#allocation8], %s2698_s5 }
  0x57   : > { %s527_s16 = scalar_lea.hbm %s3177_s1, %s3176_s3  ;;  %s568_s3 = scalar_lea.vmem [#allocation9], %s2725_s24 }
  0x58   : > { %s529_s15 = sshll.u32 %s527_s16, 4  ;;  %s576_s7 = sshll.u32 %s568_s3, 4  ;;  %s530_s15 = int_to_ptr.hbm [resolvable:$true] %s529_s15  ;;  %s577_s7 = int_to_ptr.vmem [resolvable:$true] %s576_s7 }
  0x59   : > { %1908 = dma.hbm_to_vmem [thread:$0]  (!%p2693_p1), %s530_s15, 128, %s532_s23, %s520_s9  }
  0x5a   : > { %s3181_s8 = sld [smem:[#allocation49_spill]]  ;;  %s3182_s15 = scalar_lea.sflag [#allocation11], %s2698_s5 }
  0x5b   : > { %s3183_s11 = sld [smem:[#allocation52_spill]]  ;;  %s673_s3 = scalar_lea.vmem [#allocation15], %s2722_s19 }
  0x5c   : > { %s573_s17 = scalar_lea.hbm %s3179_s4, %s2728_s2  ;;  %s3185_s12 = sld [smem:[#allocation53_spill]] }
  0x5d   : > { %s574_s21 = sshll.u32 %s573_s17, 4  ;;  %s624_s17 = scalar_lea.vmem [#allocation12], %s2725_s24  ;;  %s575_s21 = int_to_ptr.hbm [resolvable:$true] %s574_s21 }
  0x5e   : > { %1914 = dma.hbm_to_vmem [thread:$0]  (!%p2710_p3), %s575_s21, 256, %s577_s7, %s3180_s10, %s2453_s0, %s2453_s0, %s2454_s14  }
  0x5f   : > { %s632_s16 = sshll.u32 %s624_s17, 4  ;;  %s3184_s24 = scalar_lea.sflag [#allocation14], %s2698_s5  ;;  %s633_s16 = int_to_ptr.vmem [resolvable:$true] %s632_s16 }
  0x60   : > { %s629_s20 = scalar_lea.hbm %s3181_s8, %s2728_s2  ;;  %s680_s2 = sshll.u32 %s673_s3, 4  ;;  %s681_s2 = int_to_ptr.vmem [resolvable:$true] %s680_s2 }
  0x61   : > { %s630_s18 = sshll.u32 %s629_s20, 4  ;;  %s676_s22 = scalar_lea.hbm %s3183_s11, %s2443_s29  ;;  %s631_s18 = int_to_ptr.hbm [resolvable:$true] %s630_s18 }
  0x62   : > { %1920 = dma.hbm_to_vmem [thread:$0]  (!%p2710_p3), %s631_s18, 256, %s633_s16, %s3182_s15, %s2453_s0, %s2453_s0, %s2454_s14  }
  0x63   : > { %s678_s21 = sshll.u32 %s676_s22, 4  ;;  %s693_s9 = scalar_lea.hbm %s3185_s12, %s2443_s29  ;;  %s679_s21 = int_to_ptr.hbm [resolvable:$true] %s678_s21 }
  0x64   : > { %1926 = dma.hbm_to_vmem [thread:$0]  (!%p2710_p3), %s679_s21, 16, %s681_s2, %s3184_s24  }
  0x65   : > { %s690_s23 = scalar_lea.vmem [#allocation16], %s2722_s19  ;;  %s695_s17 = sshll.u32 %s693_s9, 4  ;;  %s696_s17 = int_to_ptr.hbm [resolvable:$true] %s695_s17 }
  0x66   : > { %s697_s20 = sshll.u32 %s690_s23, 4  ;;  %s688_s0 = scalar_lea.sflag [#allocation17], %s2722_s19  ;;  %s698_s20 = int_to_ptr.vmem [resolvable:$true] %s697_s20 }
  0x67   : > { %1929 = dma.hbm_to_vmem [thread:$0]  (!%p2710_p3), %s696_s17, 16, %s698_s20, %s688_s0  }
  0x68   : > { %712 = sbr.rel (%p2730_p4) target bundleno = 2164 (0x874), region = 84  ;;  %s2814_s18 = sand.u32 (!%p2730_p4), 1, %s2427_s25  }
  0x69   : > { %s1818_s5 = sshll.u32 (!%p2730_p4), %s2814_s18, 3  ;;  %s715_s16 = scalar_lea.sflag (!%p2730_p4), [#allocation5], %s2814_s18 }
  0x6a   : > { %s2818_s15 = scalar_lea.vmem (!%p2730_p4), [#allocation4], %s1818_s5 }
  0x6d   : > { %2382 = dma.done.wait (%p2639_p7), %s715_s16, 128  }
  0x6e   : > { %2384 = vsyncadd (%p2639_p7), %s715_s16, 4294967168  ;;  %s3187_s27 = sld [smem:[#allocation32_spill]]  ;;  %s2825_s28 = scalar_lea.vmem [#allocation7], %s1818_s5 }
  0x74   : > { %s724_s19 = sand.u32 1, %s3187_s27  }
  0x75   : > { %s725_s13 = scalar_lea.sflag [#allocation8], %s724_s19 }
  0x76   : > { %2386 = dma.done.wait (%p2639_p7), %s725_s13, 128  }
  0x77   : > { %2388 = vsyncadd (%p2639_p7), %s725_s13, 4294967168  ;;  %s3188_s6 = sld [smem:[#allocation26_spill]] }
  0x7d   : > { %s2832_s21 = sand.u32 1, %s3188_s6  }
  0x7e   : > { %s2835_s3 = sshll.u32 %s2832_s21, 4 }
  0x7f   : > { %2390 = dma.done.wait (%p2663_p13), %s725_s13, 256  }
  0x80   : > { %2392 = vsyncadd (%p2663_p13), %s725_s13, 4294967040  ;;  %s745_s24 = scalar_lea.sflag [#allocation11], %s724_s19 }
  0x81   : > { %2394 = dma.done.wait (%p2663_p13), %s745_s24, 512  }
  0x82   : > { %2396 = vsyncadd (%p2663_p13), %s745_s24, 4294966784  ;;  %s765_s9 = scalar_lea.sflag [#allocation14], %s724_s19 }
  0x83   : > { %2398 = dma.done.wait (%p2663_p13), %s765_s9, 272  }
  0x84   : > { %2400 = vsyncadd (%p2663_p13), %s765_s9, 4294967024  ;;  %s784_s17 = scalar_lea.sflag [#allocation17], %s2832_s21 }
  0x85   : > { %2402 = dma.done.wait (%p2663_p13), %s784_s17, 16  }
  0x86   : > { %2404 = vsyncadd (%p2663_p13), %s784_s17, 4294967280  ;;  %s3190_s14 = sld [smem:[#allocation30_spill]]  ;;  %v2883_v0 = vld [vmem:[%s2818_s15] sm:$0xff]  ;;  %s887_s9 = scalar_lea.vmem [#allocation18], %s2814_s18 }
  0x87   : > { %s3191_s5 = sld [smem:[#allocation29_spill]] }
  0x88   : > { %s3192_s6 = sld [smem:[#allocation41_spill]] }
  0x89   : > { %s3193_s17 = sld [smem:[#allocation43_spill]] }
  0x8a   : > { %s3194_s10 = sld [smem:[#allocation46_spill]] }
  0x8b   : > { %s3195_s4 = sld [smem:[#allocation48_spill]] }
  0x8c   : > { %p888_p7 = scmp.lt.s32.totalorder %s3190_s14, 3  ;;  %s3196_s13 = sld [smem:[#allocation50_spill]] }
  0x8d   : > { %p896_p11 = scmp.lt.s32.totalorder %s3191_s5, 3  ;;  %s3197_s24 = sld [smem:[#allocation54_spill]] }
  0x8e   : > { %s3241_s14 = smov (!%p888_p7, %s3190_s14), 3  ;;  %p1826_p12 = scmp.ne.s32.totalorder %s3191_s5, 0 }
  0x8f   : > { %s2864_s16 = scalar_select %p896_p11, %s3191_s5, 3 }
  0x90   : > { %s1824_s27 = sshll.u32 %s3241_s14, 3  ;;  %914 = sbr.rel (%p1826_p12) target bundleno = 533 (0x215), region = 120 }
  0x91   : > { %s2869_s22 = scalar_lea.vmem %s3192_s6, %s1824_s27  ;;  %s895_s0 = scalar_lea.vmem %s3193_s17, %s1824_s27 }
  0x92   : > { %s898_s7 = scalar_lea.vmem %s3194_s10, %s2864_s16  ;;  %s901_s8 = scalar_lea.vmem %s3195_s4, %s2864_s16  ;;  %v2885_v1 = vld [vmem:[%s895_s0] sm:$0xff] }
  0x93   : > { %s904_s6 = scalar_lea.vmem %s3196_s13, %s2864_s16  ;;  %s907_s27 = scalar_lea.vmem %s3197_s24, %s2864_s16 }
  0x95   : > { %vm922_vm0 = vcmp.gt.f32.partialorder %v2885_v1, 0.5  ;;  %v2455_v2 = vmov 0   ;;  %v918_v4 = vld [vmem:[%s2825_s28] sm:$0xff]  ;;  %vm920_vm1 = vcmp.gt.f32.partialorder %v2883_v0, 0.5  ;;  %vm929_vm2 = vcmask 64512  }
  0x96   : > { %2035 = vset.pattern.permute.xlu0 %v2455_v2  ;;  %v923_v3 = vsel %vm922_vm0, 1, %v2455_v2  ;;  %v919_v5 = vand.u32 2147483647, %v918_v4  ;;  %v915_v15 = vld [vmem:[%s2869_s22] sm:$0xff]  ;;  %vm916_vm4 = vcmask 261120  }
  0x97   : > { %925 = vperm.xlu0 %2035, %v923_v3   ;;  %917 = vst.msk [vmem:[#allocation2] sm:$0xff] %vm916_vm4, %v915_v15 }
  0x98   : > { %v921_v6 = vsel %vm920_vm1, %v919_v5, -1e+30 }
 0x109   : > { %v926_v7 = vpop.permute.xlu0 %925 }
 0x10a   : > { %vm927_vm3 = vcmp.eq.s32.totalorder %v926_v7, 1 }
 0x10b   : > { %v928_v8 = vsel %vm927_vm3, 0.0, %v921_v6 }
 0x10c   : > { %v930_v9 = vsel %vm929_vm2, %v928_v8, -inf }
 0x10d   : > { %931 = vmax.xlane.f32.xlu0 %v930_v9 }
 0x180   : > { %v932_v10 = vpop.xlane.xlu0 %931 }
 0x181   : > { %v933_v11 = vsub.f32 %v928_v8, %v932_v10 }
 0x183   : > { %v934_v12 = vmul.f32 1.442695, %v933_v11 }
 0x185   : > { %2036 = vpow2.f32 %v934_v12 }
 0x18b   : > { %v2037_v13 = vpop.eup %2036 }
 0x18c   : > { %v936_v14 = vsel %vm929_vm2, %v2037_v13, 0.0 }
 0x18d   : > { %937 = vadd.xlane.f32.xlu1 %v936_v14 }
 0x200   : > { %v938_v16 = vpop.xlane.xlu1 %937 }
 0x201   : > { %2038 = vrcp.f32 %v938_v16  ;;  %v950_v20 = vand.u32 2147483648, %v938_v16  ;;  %v948_v22 = vand.u32 2147483647, %v938_v16  ;;  %vm944_vm6 = vweird.f32 %v938_v16 }
 0x203   : > { %v951_v24 = vor.u32 1.1754944e-38, %v950_v20  ;;  %vm949_vm8 = vcmp.eq.f32.partialorder %v948_v22, 8.507059e+37 }
 0x207   : > { %v2039_v17 = vpop.eup %2038 }
 0x208   : > { %v940_v18 = vmul.f32 %v2039_v17, %v938_v16  ;;  %vm945_vm5 = vweird.f32 %v2039_v17 }
 0x209   : > { %vm946_vm7 = vmor %vm944_vm6, %vm945_vm5 }
 0x20a   : > { %v941_v19 = vsub.f32 1.0, %v940_v18 }
 0x20c   : > { %v942_v21 = vmul.f32 %v2039_v17, %v941_v19 }
 0x20e   : > { %v943_v23 = vadd.f32 %v2039_v17, %v942_v21 }
 0x210   : > { %v947_v25 = vsel %vm946_vm7, %v2039_v17, %v943_v23 }
 0x211   : > { %v952_v26 = vsel %vm949_vm8, %v951_v24, %v947_v25 }
 0x212   : > { %v953_v27 = vmul.f32 %v2037_v13, %v952_v26 }
 0x214   : > { %954 = vst.msk [vmem:[#allocation3] sm:$0xff] %vm929_vm2, %v953_v27 }
 0x215 PF: > { %s3198_s1 = scalar_lea.vmem [#allocation9], %s2835_s3  ;;  %s3199_s4 = scalar_lea.vmem [#allocation10], %s2835_s3  ;;  %v2916_v34 = vld [vmem:[#allocation2] sm:$0xff]  ;;  %vm977_vm9 = vcmask 261120   ;;  %v2456_v42 = vmov 0   ;;  %vm1068_vm10 = vcmask 1043456  }
 0x216   : > { %v1880_v28 = vld [vmem:[%s3198_s1 + $0x8] sm:$0xff]  ;;  %s3200_s11 = scalar_lea.vmem [#allocation12], %s2835_s3  ;;  %s3201_s12 = smov %s3198_s1  ;;  %v956_v35 = vpack.c.bf16 %v2916_v34, %v2916_v34  ;;  %v2041_v36 = vld [vmem:[%s898_s7] ss:$0 sm:$0xff]  ;;  %2040 = vset.pattern.permute.xlu0 %v2456_v42  ;;  %vm1064_vm11 = vcmask 64512   ;;  %vm1108_vm12 = vcmp.gt.f32.partialorder %v2885_v1, 0.5 }
 0x217   : > { %v1882_v29 = vld [vmem:[%s3199_s4 + $0x8] sm:$0xff]  ;;  %v1879_v31 = vld [vmem:[%s3201_s12] sm:$0xff]  ;;  %s3202_s15 = smov %s3199_s4  ;;  %987 = vmatpush.bf16.msra.mxu0 %v1880_v28  ;;  %s3203_s28 = smov %s3200_s11  ;;  %v1109_v57 = vsel %vm1108_vm12, 1, %v2456_v42  ;;  %vm1106_vm13 = vcmp.gt.f32.partialorder %v2883_v0, 0.5 }
 0x218   : > { %v1884_v30 = vld [vmem:[%s3200_s11 + $0x8] sm:$0xff]  ;;  %v1881_v32 = vld [vmem:[%s3202_s15] sm:$0xff]  ;;  %1021 = vmatpush.bf16.msra.mxu1 %v1882_v29  ;;  %s2457_s7 = smov 112   ;;  %s2458_s19 = smov 120  }
 0x219   : > { %v1883_v33 = vld [vmem:[%s3203_s28] sm:$0xff]  ;;  %1054 = vmatpush.bf16.msra.mxu2 %v1884_v30  ;;  %s2460_s13 = smov 8   ;;  %s2462_s24 = smov 24  }
 0x21a   : > { %v2042_v37 = vld [vmem:[%s901_s8] ss:$0 sm:$0xff]  ;;  %s2459_s8 = smov 104   ;;  %s3207_s1 = scalar_lea.vmem [#allocation13], %s2835_s3 }
 0x21b   : > { %988 = vmatpush.bf16.msra.mxu0 %v1879_v31  ;;  %v2043_v45 = vld [vmem:[%s904_s6] ss:$0 sm:$0xff]  ;;  %v1062_v51 = vld [vmem:[#allocation3] sm:$0xff]  ;;  %s2461_s6 = smov 16   ;;  %s3208_s4 = smov %s3207_s1 }
 0x21c   : > { %1022 = vmatpush.bf16.msra.mxu1 %v1881_v32  ;;  %v1063_v54 = vpack.c.bf16 %v1062_v51, %v1062_v51  ;;  %s3209_s11 = scalar_lea.vmem [#allocation15], %s2832_s21  ;;  %s3210_s3 = scalar_lea.vmem [#allocation16], %s2832_s21 }
 0x21d   : > { %1055 = vmatpush.bf16.msra.mxu2 %v1883_v33  ;;  %s3212_s2 = sld [smem:[#allocation29_spill]] }
 0x21e   : > { %1835 = vmatmul.msk.bf16.vlgmr.msra.gmra.mxu0 %vm977_vm9, %v956_v35 }
 0x21f   : > { %1844 = vmatmul.msk.bf16.vlgmr.msra.gmra.mxu1 %vm977_vm9, %v956_v35 }
 0x220   : > { %1853 = vmatmul.msk.bf16.vlgmr.msra.gmra.mxu2 %vm977_vm9, %v956_v35 }
 0x223   : > { %p1872_p13 = scmp.ne.s32.totalorder %s3212_s2, 3 }
 0x224   : > { %s3214_s20 = sld [smem:[#allocation56_spill]] (!%p1872_p13) }
 0x29b   : > { %v990_v38 = vpop.f32.mrf.mxu0 }
 0x29c   : > { %v1024_v39 = vpop.f32.mrf.mxu1  ;;  %v991_v40 = vadd.f32 %v2041_v36, %v990_v38 }
 0x29d   : > { %v1025_v41 = vadd.f32 %v2042_v37, %v1024_v39 }
 0x29e   : > { %v994_v43 = vmul.f32 0.35355338, %v991_v40 }
 0x29f   : > { %v1086_v44 = vpack.c.bf16 %v1025_v41, %v1025_v41 }
 0x2a0   : > { %v1085_v46 = vpack.c.bf16 %v994_v43, %v994_v43 }
 0x2a1   : > { %1234 = vrot.lane.b32.xlu1 %v1086_v44, %s2457_s7  ;;  %1160 = vrot.lane.b32.xlu0 %v1086_v44, %s2458_s19  ;;  %v1091_v55 = vsel %vm1064_vm11, %v1086_v44, 0 }
 0x2a2   : > { %1232 = vrot.lane.b32.xlu2 %v1085_v46, %s2457_s7 }
 0x2a3   : > { %v1057_v47 = vpop.f32.mrf.mxu2  ;;  %v992_v49 = vpop.f32.mrf.mxu0 }
 0x2a4   : > { %v1058_v48 = vadd.f32 %v2043_v45, %v1057_v47  ;;  %v1026_v50 = vpop.f32.mrf.mxu1 }
 0x2a6   : > { %v2941_v52 = vpack.c.bf16 %v1058_v48, %v1058_v48 }
 0x2a8   : > { %v1070_v53 = vsel %vm1068_vm10, %v2941_v52, 0  ;;  %v1209_v32 = vunpack.c.l.b16 %v2941_v52 }
 0x2a9   : > { %1079 = vmatpush.bf16.msra.mxu3 %v1070_v53  ;;  %1305 = vrot.lane.b32.xlu1 %v1086_v44, %s2459_s8 }
 0x2aa   : > { %1157 = vrot.lane.b32.xlu0 %v1085_v46, %s2458_s19  ;;  %1303 = vrot.lane.b32.xlu2 %v1085_v46, %s2459_s8  ;;  %v1210_v33 = vpack.c.b16 %v1209_v32, %v1209_v32 }
 0x2ab   : > { %v1059_v56 = vpop.f32.mrf.mxu2  ;;  %1150 = vmatpush.bf16.msrb.mxu0 %v1070_v53 }
 0x2ac   : > { %1854 = vmatmul.msk.bf16.vlgmr.msra.gmra.mxu3 %vm1064_vm11, %v1063_v54 }
 0x2ad   : > { %1100 = vmatpush.bf16.xpose.msrb.mxu3 %v1091_v55 }
 0x2b2   : > { %1111 = vperm.xlu0 %2040, %v1109_v57  }
 0x2bc   : > { %1855 = vmatmul.msk.bf16.vlgmr.msrb.gmra.mxu3 %vm1064_vm11, %v1085_v46 }
 0x2fc   : > { %v1233_v62 = vpop.permute.xlu2 %1232 }
 0x304   : > { %v1304_v1 = vpop.permute.xlu2 %1303 }
 0x313   : > { %v1235_v58 = vpop.permute.xlu1 %1234  ;;  %v1161_v59 = vpop.permute.xlu0 %1160 }
 0x314   : > { %v1240_v60 = vsel %vm1064_vm11, %v1235_v58, 0  ;;  %v1166_v61 = vsel %vm1064_vm11, %v1161_v59, 0 }
 0x315   : > { %1175 = vmatpush.bf16.xpose.msrb.mxu1 %v1166_v61  ;;  %1249 = vmatpush.bf16.xpose.msra.mxu3 %v1240_v60 }
 0x31b   : > { %v1306_v63 = vpop.permute.xlu1 %1305 }
 0x31c   : > { %v1311_v2 = vsel %vm1064_vm11, %v1306_v63, 0  ;;  %v1158_v3 = vpop.permute.xlu0 %1157  ;;  %1859 = vmatmul.msk.bf16.vlgmr.msra.gmra.mxu3 %vm1064_vm11, %v1233_v62 }
 0x31d   : > { %1857 = vmatmul.msk.bf16.vlgmr.msrb.gmra.mxu1 %vm1064_vm11, %v1158_v3 }
 0x31e   : > { %1320 = vmatpush.bf16.xpose.msra.mxu1 %v1311_v2 }
 0x324   : > { %v1112_v6 = vpop.permute.xlu0 %1111 }
 0x325   : > { %vm1113_vm14 = vcmp.eq.s32.totalorder %v1112_v6, 1 }
 0x32d   : > { %1861 = vmatmul.msk.bf16.vlgmr.msra.gmra.mxu1 %vm1064_vm11, %v1304_v1 }
 0x32f   : > { %v2958_v4 = vpop.f32.mrf.mxu3 }
 0x337   : > { %v1083_v5 = vpop.f32.mrf.mxu3 }
 0x33f   : > { %v1102_v7 = vpop.f32.mrf.mxu3 }
 0x340   : > { %v1107_v8 = vsel %vm1106_vm13, %v1102_v7, -1e+30 }
 0x341   : > { %v1114_v9 = vsel %vm1113_vm14, 0.0, %v1107_v8 }
 0x342   : > { %v1115_v10 = vsel %vm1064_vm11, %v1114_v9, -inf }
 0x343   : > { %1116 = vmax.xlane.f32.xlu2 %v1115_v10 }
 0x347   : > { %v1104_v11 = vpop.f32.mrf.mxu3 }
 0x39a   : > { %v1177_v12 = vpop.f32.mrf.mxu1 }
 0x39b   : > { %v1181_v13 = vsel %vm1106_vm13, %v1177_v12, -1e+30 }
 0x39c   : > { %v1182_v14 = vsel %vm1113_vm14, 0.0, %v1181_v13 }
 0x39d   : > { %v1183_v15 = vsel %vm1064_vm11, %v1182_v14, -inf }
 0x39e   : > { %1184 = vmax.xlane.f32.xlu1 %v1183_v15 }
 0x39f   : > { %v1251_v16 = vpop.f32.mrf.mxu3 }
 0x3a0   : > { %v1255_v17 = vsel %vm1106_vm13, %v1251_v16, -1e+30 }
 0x3a1   : > { %v1256_v18 = vsel %vm1113_vm14, 0.0, %v1255_v17 }
 0x3a2   : > { %v1179_v19 = vpop.f32.mrf.mxu1  ;;  %v1257_v20 = vsel %vm1064_vm11, %v1256_v18, -inf }
 0x3a3   : > { %1258 = vmax.xlane.f32.xlu2 %v1257_v20 }
 0x3a7   : > { %v1253_v21 = vpop.f32.mrf.mxu3 }
 0x3aa   : > { %v1322_v22 = vpop.f32.mrf.mxu1 }
 0x3ab   : > { %v1326_v23 = vsel %vm1106_vm13, %v1322_v22, -1e+30 }
 0x3ac   : > { %v1327_v24 = vsel %vm1113_vm14, 0.0, %v1326_v23 }
 0x3ad   : > { %v1328_v25 = vsel %vm1064_vm11, %v1327_v24, -inf }
 0x3ae   : > { %1329 = vmax.xlane.f32.xlu0 %v1328_v25 }
 0x3b2   : > { %v1324_v26 = vpop.f32.mrf.mxu1 }
 0x3b6   : > { %v1117_v27 = vpop.xlane.xlu2 %1116 }
 0x3b7   : > { %v1118_v28 = vsub.f32 %v1114_v9, %v1117_v27 }
 0x3b9   : > { %v1119_v29 = vmul.f32 1.442695, %v1118_v28 }
 0x3bb   : > { %2047 = vpow2.f32 %v1119_v29 }
 0x3c1   : > { %v2048_v30 = vpop.eup %2047 }
 0x3c2   : > { %v1121_v31 = vsel %vm1064_vm11, %v2048_v30, 0.0 }
 0x3c3   : > { %1122 = vadd.xlane.f32.xlu2 %v1121_v31 }
 0x3db   : > { %1211 = vrot.lane.b32.xlu2 %v1210_v33, %s2458_s19 }
 0x411   : > { %v1185_v0 = vpop.xlane.xlu1 %1184 }
 0x412   : > { %v1186_v35 = vsub.f32 %v1182_v14, %v1185_v0 }
 0x414   : > { %v1187_v36 = vmul.f32 1.442695, %v1186_v35 }
 0x416   : > { %2049 = vpow2.f32 %v1187_v36  ;;  %v1259_v37 = vpop.xlane.xlu2 %1258 }
 0x417   : > { %v1260_v38 = vsub.f32 %v1256_v18, %v1259_v37 }
 0x419   : > { %v1261_v39 = vmul.f32 1.442695, %v1260_v38 }
 0x41b   : > { %2051 = vpow2.f32 %v1261_v39 }
 0x41c   : > { %v2980_v40 = vpop.eup %2049 }
 0x41d   : > { %v1189_v41 = vsel %vm1064_vm11, %v2980_v40, 0.0 }
 0x41e   : > { %1190 = vadd.xlane.f32.xlu1 %v1189_v41 }
 0x421   : > { %v2984_v42 = vpop.eup %2051  ;;  %v1330_v43 = vpop.xlane.xlu0 %1329 }
 0x422   : > { %v1331_v44 = vsub.f32 %v1327_v24, %v1330_v43  ;;  %v1263_v45 = vsel %vm1064_vm11, %v2984_v42, 0.0 }
 0x423   : > { %1264 = vadd.xlane.f32.xlu0 %v1263_v45 }
 0x424   : > { %v1332_v46 = vmul.f32 1.442695, %v1331_v44 }
 0x426   : > { %2053 = vpow2.f32 %v1332_v46 }
 0x42c   : > { %v2988_v47 = vpop.eup %2053 }
 0x42d   : > { %v1334_v48 = vsel %vm1064_vm11, %v2988_v47, 0.0 }
 0x42e   : > { %1335 = vadd.xlane.f32.xlu1 %v1334_v48 }
 0x436   : > { %v1123_v49 = vpop.xlane.xlu2 %1122 }
 0x437   : > { %2055 = vrcp.f32 %v1123_v49  ;;  %1282 = vrot.lane.b32.xlu0 %v1210_v33, %s2457_s7  ;;  %v1135_v55 = vand.u32 2147483648, %v1123_v49  ;;  %v1133_v57 = vand.u32 2147483647, %v1123_v49  ;;  %vm1129_vm0 = vweird.f32 %v1123_v49 }
 0x439   : > { %v1136_v59 = vor.u32 1.1754944e-38, %v1135_v55  ;;  %vm1134_vm2 = vcmp.eq.f32.partialorder %v1133_v57, 8.507059e+37 }
 0x43d   : > { %v2056_v50 = vpop.eup %2055 }
 0x43e   : > { %v1125_v51 = vmul.f32 %v2056_v50, %v1123_v49  ;;  %v1212_v52 = vpop.permute.xlu2 %1211  ;;  %vm1130_vm15 = vweird.f32 %v2056_v50 }
 0x43f   : > { %v1217_v53 = vsel %vm1068_vm10, %v1212_v52, 0  ;;  %vm1131_vm1 = vmor %vm1129_vm0, %vm1130_vm15 }
 0x440   : > { %v1126_v54 = vsub.f32 1.0, %v1125_v51  ;;  %1226 = vmatpush.bf16.msrb.mxu2 %v1217_v53  ;;  %v1886_v53 = vld [vmem:[%s3207_s1 + $0x8] sm:$0xff] }
 0x441   : > { %1423 = vmatpush.bf16.msrb.mxu3 %v1886_v53 }
 0x442   : > { %v1127_v56 = vmul.f32 %v2056_v50, %v1126_v54  ;;  %v1885_v54 = vld [vmem:[%s3208_s4] sm:$0xff] }
 0x444   : > { %v1128_v58 = vadd.f32 %v2056_v50, %v1127_v56 }
 0x445   : > { %1424 = vmatpush.bf16.msrb.mxu3 %v1885_v54 }
 0x446   : > { %v1132_v60 = vsel %vm1131_vm1, %v2056_v50, %v1128_v58 }
 0x447   : > { %1353 = vrot.lane.b32.xlu1 %v1210_v33, %s2459_s8  ;;  %v1137_v61 = vsel %vm1134_vm2, %v1136_v59, %v1132_v60  ;;  %vm1389_vm2 = vcmask 195584  }
 0x448   : > { %v1138_v62 = vmul.f32 %v2048_v30, %v1137_v61 }
 0x44a   : > { %v1139_v63 = vpack.c.bf16 %v1138_v62, %v1138_v62 }
 0x44c   : > { %1856 = vmatmul.msk.bf16.vlgmr.msrb.gmra.mxu0 %vm1064_vm11, %v1139_v63 }
 0x491   : > { %v1191_v2 = vpop.xlane.xlu1 %1190 }
 0x492   : > { %2057 = vrcp.f32 %v1191_v2  ;;  %v1201_v9 = vand.u32 2147483647, %v1191_v2  ;;  %v1203_v10 = vand.u32 2147483648, %v1191_v2  ;;  %vm1197_vm4 = vweird.f32 %v1191_v2 }
 0x494   : > { %vm1202_vm6 = vcmp.eq.f32.partialorder %v1201_v9, 8.507059e+37  ;;  %v1204_v14 = vor.u32 1.1754944e-38, %v1203_v10 }
 0x496   : > { %v1265_v3 = vpop.xlane.xlu0 %1264 }
 0x497   : > { %2059 = vrcp.f32 %v1265_v3  ;;  %v1277_v15 = vand.u32 2147483648, %v1265_v3  ;;  %v1275_v19 = vand.u32 2147483647, %v1265_v3  ;;  %vm1271_vm8 = vweird.f32 %v1265_v3 }
 0x498   : > { %v2058_v1 = vpop.eup %2057 }
 0x499   : > { %v1193_v5 = vmul.f32 %v2058_v1, %v1191_v2  ;;  %vm1198_vm3 = vweird.f32 %v2058_v1  ;;  %v1278_v23 = vor.u32 1.1754944e-38, %v1277_v15  ;;  %vm1276_vm13 = vcmp.eq.f32.partialorder %v1275_v19, 8.507059e+37  ;;  %v2044_v2 = vld [vmem:[%s3209_s11] ss:$0 sm:$0xff] }
 0x49a   : > { %vm1199_vm5 = vmor %vm1197_vm4, %vm1198_vm3 }
 0x49b   : > { %v1194_v6 = vsub.f32 1.0, %v1193_v5 }
 0x49d   : > { %v2060_v7 = vpop.eup %2059  ;;  %v1195_v8 = vmul.f32 %v2058_v1, %v1194_v6 }
 0x49e   : > { %v1267_v11 = vmul.f32 %v2060_v7, %v1265_v3  ;;  %vm1272_vm7 = vweird.f32 %v2060_v7 }
 0x49f   : > { %v1196_v12 = vadd.f32 %v2058_v1, %v1195_v8  ;;  %vm1273_vm12 = vmor %vm1271_vm8, %vm1272_vm7  ;;  %v2463_v8 = vmov 32.0  }
 0x4a0   : > { %v1268_v13 = vsub.f32 1.0, %v1267_v11 }
 0x4a1   : > { %v1336_v16 = vpop.xlane.xlu1 %1335  ;;  %v1200_v17 = vsel %vm1199_vm5, %v2058_v1, %v1196_v12 }
 0x4a2   : > { %v1269_v18 = vmul.f32 %v2060_v7, %v1268_v13  ;;  %2061 = vrcp.f32 %v1336_v16  ;;  %v1205_v20 = vsel %vm1202_vm6, %v1204_v14, %v1200_v17  ;;  %v1348_v36 = vand.u32 2147483648, %v1336_v16 }
 0x4a3   : > { %v1206_v22 = vmul.f32 %v2980_v40, %v1205_v20  ;;  %vm1342_vm15 = vweird.f32 %v1336_v16  ;;  %v1346_v37 = vand.u32 2147483647, %v1336_v16  ;;  %2063 = vrcp.f32 %v2463_v8 }
 0x4a4   : > { %v1270_v21 = vadd.f32 %v2060_v7, %v1269_v18  ;;  %v1349_v39 = vor.u32 1.1754944e-38, %v1348_v36 }
 0x4a5   : > { %v1207_v25 = vpack.c.bf16 %v1206_v22, %v1206_v22  ;;  %vm1347_vm1 = vcmp.eq.f32.partialorder %v1346_v37, 8.507059e+37 }
 0x4a6   : > { %v1274_v24 = vsel %vm1273_vm12, %v2060_v7, %v1270_v21 }
 0x4a7   : > { %v1279_v26 = vsel %vm1276_vm13, %v1278_v23, %v1274_v24  ;;  %1858 = vmatmul.msk.bf16.vlgmr.msrb.gmra.mxu2 %vm1064_vm11, %v1207_v25 }
 0x4a8   : > { %v2062_v27 = vpop.eup %2061  ;;  %v1280_v28 = vmul.f32 %v2984_v42, %v1279_v26 }
 0x4a9   : > { %v1338_v29 = vmul.f32 %v2062_v27, %v1336_v16  ;;  %v1283_v30 = vpop.permute.xlu0 %1282  ;;  %vm1343_vm14 = vweird.f32 %v2062_v27  ;;  %v2064_v9 = vpop.eup %2063 }
 0x4aa   : > { %v1288_v31 = vsel %vm1068_vm10, %v1283_v30, 0  ;;  %v1281_v33 = vpack.c.bf16 %v1280_v28, %v1280_v28  ;;  %vm1344_vm0 = vmor %vm1342_vm15, %vm1343_vm14  ;;  %v1435_v10 = vmul.f32 32.0, %v2064_v9 }
 0x4ab   : > { %v1339_v32 = vsub.f32 1.0, %v1338_v29  ;;  %1297 = vmatpush.bf16.msra.mxu0 %v1288_v31  ;;  %v2046_v29 = vld [vmem:[%s907_s27] ss:$0 sm:$0xff]  ;;  %s3213_s27 = sld [smem:[#allocation55_spill]] (!%p1872_p13) }
 0x4ac   : > { %v1436_v11 = vsub.f32 1.0, %v1435_v10 }
 0x4ad   : > { %v1340_v0 = vmul.f32 %v2062_v27, %v1339_v32 }
 0x4ae   : > { %1860 = vmatmul.msk.bf16.vlgmr.msra.gmra.mxu0 %vm1064_vm11, %v1281_v33 }
 0x4af   : > { %v1341_v35 = vadd.f32 %v2062_v27, %v1340_v0 }
 0x4b1   : > { %v1345_v38 = vsel %vm1344_vm0, %v2062_v27, %v1341_v35  ;;  %v2045_v27 = vld [vmem:[%s3210_s3] ss:$0 sm:$0xff] }
 0x4b2   : > { %v1350_v40 = vsel %vm1347_vm1, %v1349_v39, %v1345_v38 }
 0x4b3   : > { %v1351_v41 = vmul.f32 %v2988_v47, %v1350_v40 }
 0x4b5   : > { %v1352_v44 = vpack.c.bf16 %v1351_v41, %v1351_v41 }
 0x4b9   : > { %v1354_v42 = vpop.permute.xlu1 %1353 }
 0x4ba   : > { %v1359_v43 = vsel %vm1068_vm10, %v1354_v42, 0  ;;  %vm1387_vm10 = vcmask 130048  }
 0x4bb   : > { %1368 = vmatpush.bf16.msra.mxu2 %v1359_v43 }
 0x4be   : > { %1862 = vmatmul.msk.bf16.vlgmr.msra.gmra.mxu2 %vm1064_vm11, %v1352_v44 }
 0x4c9   : > { %v1152_v45 = vpop.f32.mrf.mxu0 }
 0x4d1   : > { %v1154_v46 = vpop.f32.mrf.mxu0 }
 0x52a   : > { %v1228_v48 = vpop.f32.mrf.mxu2 }
 0x52b   : > { %v1299_v49 = vpop.f32.mrf.mxu0  ;;  %1375 = vrot.lane.b32.xlu2 %v1228_v48, %s2460_s13 }
 0x52c   : > { %1379 = vrot.lane.b32.xlu1 %v1299_v49, %s2461_s6 }
 0x532   : > { %v1230_v50 = vpop.f32.mrf.mxu2 }
 0x533   : > { %v1301_v51 = vpop.f32.mrf.mxu0 }
 0x541   : > { %v1370_v47 = vpop.f32.mrf.mxu2 }
 0x542   : > { %1383 = vrot.lane.b32.xlu0 %v1370_v47, %s2462_s24 }
 0x549   : > { %v1372_v52 = vpop.f32.mrf.mxu2 }
 0x585   : > { %v1376_v55 = vpop.permute.xlu2 %1375 }
 0x586   : > { %v1386_v57 = vsel %vm1064_vm11, %v1152_v45, %v1376_v55  ;;  %vm1439_vm11 = vweird.f32 %v2064_v9 }
 0x59e   : > { %v1380_v56 = vpop.permute.xlu1 %1379 }
 0x59f   : > { %v1388_v58 = vsel %vm1387_vm10, %v1386_v57, %v1380_v56 }
 0x5b4   : > { %v1384_v59 = vpop.permute.xlu0 %1383 }
 0x5b5   : > { %v1390_v60 = vsel %vm1389_vm2, %v1388_v58, %v1384_v59 }
 0x5b6   : > { %v1391_v61 = vadd.f32 %v1390_v60, %v2958_v4  ;;  %v1437_v4 = vmul.f32 %v2064_v9, %v1436_v11 }
 0x5b8   : > { %v1392_v62 = vmul.f32 0.5, %v1391_v61  ;;  %v1438_v12 = vadd.f32 %v2064_v9, %v1437_v4 }
 0x5ba   : > { %v1393_v63 = vpack.c.bf16 %v1392_v62, %v1392_v62  ;;  %v1440_v13 = vsel %vm1439_vm11, %v2064_v9, %v1438_v12 }
 0x5bc   : > { %1871 = vmatmul.msk.bf16.vlgmr.msrb.gmra.mxu3 %vm977_vm9, %v1393_v63 }
 0x63f   : > { %v1426_v3 = vpop.f32.mrf.mxu3 }
 0x640   : > { %v1427_v1 = vadd.f32 %v2044_v2, %v1426_v3 }
 0x642   : > { %v1430_v5 = vadd.f32 %v1427_v1, %v2916_v34 }
 0x644   : > { %v1431_v6 = vsel %vm977_vm9, %v1430_v5, 0.0 }
 0x645   : > { %1432 = vadd.xlane.f32.xlu2 %v1431_v6 }
 0x647   : > { %v1428_v7 = vpop.f32.mrf.mxu3 }
 0x6b8   : > { %v1433_v14 = vpop.xlane.xlu2 %1432 }
 0x6b9   : > { %v1441_v15 = vmul.f32 %v1440_v13, %v1433_v14 }
 0x6bb   : > { %v1442_v16 = vsub.f32 %v1430_v5, %v1441_v15 }
 0x6bd   : > { %v1443_v17 = vmul.f32 %v1442_v16, %v1442_v16 }
 0x6bf   : > { %v1444_v34 = vsel %vm977_vm9, %v1443_v17, 0.0 }
 0x6c0   : > { %1445 = vadd.xlane.f32.xlu1 %v1444_v34 }
 0x733   : > { %v1446_v18 = vpop.xlane.xlu1 %1445 }
 0x734   : > { %v1447_v19 = vmul.f32 %v1446_v18, %v1440_v13 }
 0x736   : > { %v1448_v20 = vadd.f32 1e-05, %v1447_v19 }
 0x738   : > { %2065 = vrsqrt.f32 %v1448_v20  ;;  %vm1455_vm4 = vweird.f32 %v1448_v20 }
 0x73e   : > { %v2066_v21 = vpop.eup %2065 }
 0x73f   : > { %v1450_v22 = vmul.f32 %v2066_v21, %v1448_v20  ;;  %vm1456_vm3 = vweird.f32 %v2066_v21 }
 0x740   : > { %vm1457_vm5 = vmor %vm1455_vm4, %vm1456_vm3 }
 0x741   : > { %v1451_v23 = vmul.f32 %v2066_v21, %v1450_v22 }
 0x743   : > { %v1452_v24 = vmul.f32 0.5, %v1451_v23 }
 0x745   : > { %v1453_v25 = vsub.f32 1.5, %v1452_v24 }
 0x747   : > { %v1454_v26 = vmul.f32 %v2066_v21, %v1453_v25 }
 0x749   : > { %v1458_v28 = vsel %vm1457_vm5, %v2066_v21, %v1454_v26 }
 0x74a   : > { %v1459_v30 = vmul.f32 %v1458_v28, %v1442_v16 }
 0x74c   : > { %v1464_v31 = vmul.f32 %v2045_v27, %v1459_v30  ;;  %1474 = sbr.rel (%p1872_p13) target bundleno = 2143 (0x85f), region = 124 }
 0x74e   : > { %v1469_v32 = vadd.f32 %v2046_v29, %v1464_v31 }
 0x750   : > { %1470 = vst.msk [vmem:[#allocation2] sm:$0xff] %vm977_vm9, %v1469_v32 }
 0x751   : > { %vm1475_vm6 = vcmask 253952   ;;  %v1498_v49 = vld [vmem:[%s3213_s27] sm:$0x1] }
 0x752   : > { %v1476_v33 = vsel %vm1475_vm6, %v1469_v32, 0.0  ;;  %v1500_v47 = vld [vmem:[%s3214_s20] sm:$0x1] }
 0x753   : > { %1477 = vadd.xlane.f32.xlu0 %v1476_v33 }
 0x7c6   : > { %v1478_v0 = vpop.xlane.xlu0 %1477 }
 0x7c7   : > { %v1479_v35 = vmul.f32 %v1478_v0, %v1440_v13 }
 0x7c9   : > { %v1480_v36 = vsub.f32 %v1469_v32, %v1479_v35 }
 0x7cb   : > { %v1481_v37 = vmul.f32 %v1480_v36, %v1480_v36 }
 0x7cd   : > { %v1482_v38 = vsel %vm1475_vm6, %v1481_v37, 0.0 }
 0x7ce   : > { %1483 = vadd.xlane.f32.xlu0 %v1482_v38 }
 0x841   : > { %v1484_v39 = vpop.xlane.xlu0 %1483 }
 0x842   : > { %v1485_v40 = vmul.f32 %v1484_v39, %v1440_v13 }
 0x844   : > { %v1486_v41 = vadd.f32 1e-05, %v1485_v40 }
 0x846   : > { %2067 = vrsqrt.f32 %v1486_v41  ;;  %vm1493_vm7 = vweird.f32 %v1486_v41 }
 0x84c   : > { %v2068_v42 = vpop.eup %2067 }
 0x84d   : > { %v1488_v43 = vmul.f32 %v2068_v42, %v1486_v41  ;;  %vm1494_vm9 = vweird.f32 %v2068_v42 }
 0x84e   : > { %vm1495_vm8 = vmor %vm1493_vm7, %vm1494_vm9 }
 0x84f   : > { %v1489_v44 = vmul.f32 %v2068_v42, %v1488_v43 }
 0x851   : > { %v1490_v45 = vmul.f32 0.5, %v1489_v44 }
 0x853   : > { %v1491_v46 = vsub.f32 1.5, %v1490_v45 }
 0x855   : > { %v1492_v48 = vmul.f32 %v2068_v42, %v1491_v46 }
 0x857   : > { %v1496_v50 = vsel %vm1495_vm8, %v2068_v42, %v1492_v48 }
 0x858   : > { %v1497_v51 = vmul.f32 %v1496_v50, %v1480_v36 }
 0x85a   : > { %v1499_v52 = vmul.f32 %v1498_v49, %v1497_v51 }
 0x85c   : > { %v1501_v53 = vadd.f32 %v1500_v47, %v1499_v52 }
 0x85e   : > { %1502 = vst.msk [vmem:[%s887_s9] sm:$0x1] %vm1475_vm6, %v1501_v53 }
 0x85f PF: > { %s3215_s0 = sld [smem:[#allocation30_spill]]  ;;  %s1514_s19 = sshll.u32 %s887_s9, 4  ;;  %s1515_s19 = int_to_ptr.vmem [resolvable:$true] %s1514_s19 }
 0x860   : > { %s3216_s17 = sld [smem:[#allocation57_spill]]  ;;  %s1504_s13 = scalar_lea.sflag [#allocation6], %s2814_s18 }
 0x866   : > { %s1512_s7 = scalar_lea.hbm %s3216_s17, %s3215_s0  ;;  %s2329_s11 = scalar_lea.hbm %s3216_s17, 4 }
 0x867   : > { %s1516_s8 = sshll.u32 %s1512_s7, 4  ;;  %s1517_s8 = int_to_ptr.hbm [resolvable:$true] %s1516_s8 }
 0x868   : > { %s2323_s6 = sshra.s32 %s1517_s8, 4  ;;  %s2324_s6 = int_to_ptr.hbm [resolvable:$true] %s2323_s6 }
 0x869   : > { %s2325_s24 = scalar_lea.hbm %s2324_s6, 1  ;;  %p2330_p1 = scmp.lt.s32.totalorder %s2324_s6, %s3216_s17 }
 0x86a   : > { %p2326_p0 = scmp.ne.s32.totalorder %s2324_s6, %s2325_s24  ;;  %p2331_p3 = scmp.lt.s32.totalorder %s2329_s11, %s2325_s24 }
 0x86c   : > { %p2327_p5 = pnand %p2326_p0, %p2672_p8  ;;  %p2332_p6 = por %p2331_p3, %p2330_p1 }
 0x86e   : > { %p2328_p10 = pneg %p2327_p5 }
 0x870   : > { %p2333_p9 = pnand %p2332_p6, %p2328_p10 }
 0x872   : > { %2336 = shalt.err (!%p2333_p9)
}
 0x873   : > { %1903 = dma.vmem_to_hbm [thread:$0]  (%p2672_p8), %s1515_s19, 16, %s1517_s8, %s1504_s13  }
 0x874 PF: > { %s3218_s18 = sld [smem:[#allocation31_spill]] }
 0x875   : > { %s3219_s9 = sld [smem:[#allocation28_spill]] }
 0x87a   : > { %p1935_p4 = scmp.ge.s32.totalorder %s3218_s18, 2 }
 0x87b   : > { %s1528_s28 = sand.u32 1, %s3219_s9  }
 0x87c   : > { %p1931_p7 = pnand %p1935_p4, %p2679_p2  ;;  %s1529_s2 = scalar_lea.sflag [#allocation6], %s1528_s28 }
 0x87e   : > { %p1932_p11 = pneg %p1931_p7 }
 0x880   : > { %2406 = dma.done.wait (%p1932_p11), %s1529_s2, 16  }
 0x881   : > { %2408 = vsyncadd (%p1932_p11), %s1529_s2, 4294967280  ;;  %s44_s0 = sadd.s32 1, %s3218_s18   ;;  %s3221_s21 = sld [smem:[#allocation26_spill]] }
 0x882   : > { %p41_p12 = scmp.ge.s32.totalorder %s44_s0, 18   ;;  %s3222_s22 = sld [smem:[#allocation27_spill]] }
 0x883   : > { %s3223_s23 = sld [smem:[#allocation36_spill]]  ;;  %s3227_s24 = smov %s2427_s25 }
 0x884   : > { %s3224_s16 = sld [smem:[#allocation37_spill]]  ;;  %s3228_s25 = smov %s2431_s26 }
 0x885   : > { %s3225_s10 = sld [smem:[#allocation33_spill]]  ;;  %s3230_s27 = smov %s2443_s29 }
 0x886   : > { %s3226_s20 = sld [smem:[#allocation34_spill]]  ;;  %s3231_s28 = smov %s2447_s30 }
 0x888   :  { %43 = sbr.rel (!%p41_p12) target bundleno = 35 (0x23), region = 240 }
 0x88a   : > { %s3229_s26 = smov %s3224_s16 }
 0x88b   : > { %s3232_s29 = smov %s3225_s10 }
 0x88c   : > { %s3233_s30 = smov %s3226_s20 }
 0x88d   :  { %1534 = vsyncpa [#allocation5], 1 }
 0x88e   :  { %1536 = vsyncpa [#allocation5 + $0x1], 1 }
 0x88f   :  { %1537 = vsyncpa [#allocation8], 1 }
 0x890   :  { %1539 = vsyncpa [#allocation8 + $0x1], 1 }
 0x891   :  { %1540 = vsyncpa [#allocation11], 1 }
 0x892   :  { %1542 = vsyncpa [#allocation11 + $0x1], 1 }
 0x893   :  { %1543 = vsyncpa [#allocation14], 1 }
 0x894   :  { %1545 = vsyncpa [#allocation14 + $0x1], 1 }
 0x895   :  { %1546 = vsyncpa [#allocation17], 1 }
 0x896   :  { %1548 = vsyncpa [#allocation17 + $0x1], 1 }
 0x897   :  { %1549 = vsyncpa [#allocation6], 1 }
 0x898   :  { %1551 = vsyncpa [#allocation6 + $0x1], 1 }

</bundles_post_ra>
